<compile_context>
chip_gen: v7x
topology: tpu7x:2x2x1
jax: 0.10.0
libtpu: 0.0.40
codegen_flags: <defaults>
</compile_context>

<pallas_src>
import functools

import numpy as np
import jax
import jax.numpy as jnp
from jax import lax
from jax.experimental import pallas as pl
from jax.experimental.pallas import tpu as pltpu

KH = KW = 3
SLIDE_WINSIZE = float(KH * KW)      # single-channel mask updater: 1 * 3 * 3
EPS_MASK = 1e-8
EPS_NORM = 1e-5


def _round_up(x, m):
    return (x + m - 1) // m * m


# --------------------------------- kernel ----------------------------------- #

def partial_resblock_kernel(x_ref, m_ref, tap_ref, w1_ref, b1_ref, w2_ref,
                            b2_ref, y_ref, mout_ref, col_ref, *,
                            cin, cout, cp, nb, hw, shifts, mxu_dtype):
    """One grid step = nb samples, laid out as (channels, nb*H*W) lane-dense."""
    lanes = nb * hw

    w1 = w1_ref[...]                         # (OP, 9*CP) bf16 packed weights
    w2 = w2_ref[...]
    b1 = b1_ref[...]                         # (Cout, 1)  f32
    b2 = b2_ref[...]

    x = x_ref[...].astype(jnp.float32)       # (Cin, nb*HW)
    m = m_ref[...].astype(jnp.float32)       # (1,   nb*HW)

    pad = cp - cin - 1
    zpad = jnp.zeros((pad, lanes), jnp.float32) if pad else None   # hoisted

    def pconv(feat, msk, wr, bias):
        """Partial 3x3 conv (+ mask box-sum) as ONE MXU matmul over all nb samples."""
        parts = [feat * msk, msk]
        if pad:
            parts.append(zpad)
        z = jnp.concatenate(parts, axis=0)                         # (CP, L) f32
        # im2col: 9 XLU lane-rolls; boundary/sample-wrap handled by the
        # pre-expanded tap mask (static, sublane-aligned ref slices, no
        # broadcasts); cast to bf16 BEFORE staging into the VMEM col slab.
        for t, sh in enumerate(shifts):
            zt = z if sh == 0 else pltpu.roll(z, sh, axis=1)
            col_ref[t * cp:(t + 1) * cp, :] = (
                zt * tap_ref[t * cp:(t + 1) * cp, :]).astype(mxu_dtype)
        res = jnp.dot(wr, col_ref[...],
                      preferred_element_type=jnp.float32)          # (OP, L) f32

        conv = res[:cout, :]                   # W * (x . m), no bias
        msum = res[cout:cout + 1, :]           # 3x3 box-sum of the mask
        update = jnp.clip(msum, 0.0, 1.0)
        ratio = (SLIDE_WINSIZE *
                 pl.reciprocal(msum + EPS_MASK, approx=True)) * update   # EUP
        out = (conv * ratio + bias) * update   # PartialConv epilogue (no +b/-b trip)
        return out, update

    def inorm(y):
        """InstanceNorm2d(affine=False): per-(sample,channel) over each 256-lane slice."""
        s = jnp.concatenate([y, y * y], axis=0)        # (2*Cout, L): fused stats
        outs = []
        for j in range(nb):                            # static 256-lane slices
            lo, hi = j * hw, (j + 1) * hw
            st = jnp.mean(s[:, lo:hi], axis=1, keepdims=True)     # one reduce
            mu = st[:cout]
            var = st[cout:] - mu * mu
            outs.append((y[:, lo:hi] - mu) * lax.rsqrt(var + EPS_NORM))
        return outs[0] if nb == 1 else jnp.concatenate(outs, axis=1)

    y1, m1 = pconv(x, m, w1, b1)
    y1 = jnp.maximum(inorm(y1), 0.0)                   # norml + ReLU (fused)
    y2, m2 = pconv(y1, m1, w2, b2)
    y2 = inorm(y2)

    y_ref[...] = (x + y2).astype(y_ref.dtype)          # residual
    mout_ref[...] = m2.astype(mout_ref.dtype)


# --------------------------------- wrapper ---------------------------------- #

def _tap_valid_masks(h, w):
    """(9, H*W) f32: 1 where the (dy,dx) tap's source pixel is in-bounds."""
    hh = np.arange(h)[:, None]
    ww = np.arange(w)[None, :]
    rows = []
    for dy in range(KH):
        for dx in range(KW):
            sy, sx = dy - 1, dx - 1
            ok = ((hh + sy >= 0) & (hh + sy < h) &
                  (ww + sx >= 0) & (ww + sx < w))
            rows.append(ok.reshape(-1))
    return np.stack(rows).astype(np.float32)


def _shift_amounts(w, lanes):
    """Lane-roll amount per tap so that shifted[p] = z[p + sy*W + sx] (mod lanes)."""
    shifts = []
    for dy in range(KH):
        for dx in range(KW):
            s = (dy - 1) * w + (dx - 1)
            shifts.append((-s) % lanes)
    return tuple(shifts)


def _pack_weights(w_oihw, c, cp, op, dtype):
    """(Cout,Cin,3,3) -> (OP, 9*CP) packed matrix; row `c` is the mask box-sum."""
    w = jnp.asarray(w_oihw, jnp.float32)
    blk = jnp.zeros((KH, KW, op, cp), jnp.float32)
    blk = blk.at[:, :, :c, :c].set(jnp.transpose(w, (2, 3, 0, 1)))
    blk = blk.at[:, :, c, c].set(1.0)          # ones hitting the mask row of z
    return (jnp.transpose(blk, (2, 0, 1, 3))
            .reshape(op, KH * KW * cp).astype(dtype))


def _choose_nb(n, samples_per_block):
    if samples_per_block is not None:
        nb = max(1, min(n, samples_per_block))
    else:
        nb = min(n, 32)                 # amortize ~0.35 us per-grid-step overhead
        if n >= 2:
            nb = min(nb, n // 2)        # keep >= 2 grid steps (v7x megacore)
        nb = max(nb, 1)
    while n % nb:
        nb -= 1
    return nb


def partial_resblock(x_nchw, mask_n1hw, w1, b1, w2, b2, *,
                     samples_per_block=None, mxu_dtype=jnp.bfloat16):
    """x: (N,C,H,W); mask: (N,1,H,W); w*: (Cout,Cin,3,3), b*: (Cout,) (PyTorch)."""
    n, c, h, w = x_nchw.shape
    hw = h * w
    # TODO(synk): the lane-roll + tap-mask padding trick assumes H*W is a
    # multiple of 128; other sizes need lane padding plus recomputed
    # shifts / tap masks.
    assert hw % 128 == 0, "H*W must be a multiple of 128 for this kernel"

    cp = _round_up(c + 1, 8)     # im2col rows per tap: Cin + mask + sublane pad
    op = _round_up(c + 1, 8)     # matmul output rows: Cout + msum + sublane pad

    nb = _choose_nb(n, samples_per_block)
    g = n // nb
    lanes = nb * hw

    # Lane-major layout: (C, N*HW); each grid block is (C, nb*HW) lane-dense.
    x2 = jnp.transpose(x_nchw.reshape(n, c, hw), (1, 0, 2)).reshape(c, n * hw)
    x2 = x2.astype(jnp.float32)
    m2 = jnp.transpose(mask_n1hw.reshape(n, 1, hw), (1, 0, 2)).reshape(1, n * hw)
    m2 = m2.astype(jnp.float32)

    tap9 = _tap_valid_masks(h, w)                              # (9, HW)
    tap = np.repeat(np.tile(tap9, (1, nb)), cp, axis=0)        # (9*CP, nb*HW)
    tap = jnp.asarray(tap, jnp.float32)

    w1r = _pack_weights(w1, c, cp, op, mxu_dtype)
    w2r = _pack_weights(w2, c, cp, op, mxu_dtype)
    b1r = jnp.asarray(b1, jnp.float32).reshape(c, 1)
    b2r = jnp.asarray(b2, jnp.float32).reshape(c, 1)

    kernel = functools.partial(
        partial_resblock_kernel, cin=c, cout=c, cp=cp, nb=nb, hw=hw,
        shifts=_shift_amounts(w, lanes), mxu_dtype=mxu_dtype)

    # VMEM budget (bytes): double-buffered x/m/y/mout blocks + expanded tap +
    # bf16 col scratch + f32 intermediates.  Only raise the scoped limit when
    # needed (matters on v7x: 64 MiB physical / 32 MiB scoped default).
    bytes_mx = jnp.dtype(mxu_dtype).itemsize
    est = (2 * 2 * (c + 1) * lanes * 4
           + 2 * (KH * KW * cp) * lanes * 4
           + (KH * KW * cp) * lanes * bytes_mx
           + 16 * c * lanes * 4)
    vmem_limit = int(min(2 * est, 48 << 20)) if est > (24 << 20) else None

    const = lambda i: (0, 0)      # weights / biases / tap masks: fetched once
    y2d, m2d = pl.pallas_call(
        kernel,
        out_shape=(jax.ShapeDtypeStruct((c, n * hw), jnp.float32),
                   jax.ShapeDtypeStruct((1, n * hw), jnp.float32)),
        grid=(g,),
        in_specs=[
            pl.BlockSpec((c, lanes), lambda i: (0, i)),          # x
            pl.BlockSpec((1, lanes), lambda i: (0, i)),          # mask
            pl.BlockSpec((KH * KW * cp, lanes), const),          # expanded taps
            pl.BlockSpec((op, KH * KW * cp), const),             # packed w1
            pl.BlockSpec((c, 1), const),                         # b1
            pl.BlockSpec((op, KH * KW * cp), const),             # packed w2
            pl.BlockSpec((c, 1), const),                         # b2
        ],
        out_specs=[
            pl.BlockSpec((c, lanes), lambda i: (0, i)),          # y (lane-dense)
            pl.BlockSpec((1, lanes), lambda i: (0, i)),          # updated mask
        ],
        scratch_shapes=[pltpu.VMEM((KH * KW * cp, lanes), mxu_dtype)],  # col slab
        compiler_params=pltpu.CompilerParams(
            dimension_semantics=("parallel",),
            vmem_limit_bytes=vmem_limit),
    )(x2, m2, tap, w1r, b1r, w2r, b2r)

    y = jnp.transpose(y2d.reshape(c, n, h, w), (1, 0, 2, 3))
    m_out = jnp.transpose(m2d.reshape(1, n, h, w), (1, 0, 2, 3))
    return y, m_out


# --------------------------- pure-JAX reference ----------------------------- #

def _quant(x, dtype):
    return x.astype(dtype).astype(jnp.float32)


def _pconv_ref(x, m, wgt, b, mxu_dtype):
    dn_x = lax.conv_dimension_numbers(x.shape, wgt.shape, ('NCHW', 'OIHW', 'NCHW'))
    ones = jnp.ones((1, 1, KH, KW), jnp.float32)
    dn_m = lax.conv_dimension_numbers(m.shape, ones.shape, ('NCHW', 'OIHW', 'NCHW'))
    update = lax.conv_general_dilated(m, ones, (1, 1), ((1, 1), (1, 1)),
                                      dimension_numbers=dn_m,
                                      precision=lax.Precision.HIGHEST)
    uc = jnp.clip(update, 0.0, 1.0)
    ratio = (SLIDE_WINSIZE / (update + EPS_MASK)) * uc
    raw = lax.conv_general_dilated(_quant(x * m, mxu_dtype), _quant(wgt, mxu_dtype),
                                   (1, 1), ((1, 1), (1, 1)),
                                   dimension_numbers=dn_x,
                                   precision=lax.Precision.HIGHEST)
    bb = b[None, :, None, None]
    return (raw * ratio + bb) * uc, uc


def _inorm_ref(y):
    mu = jnp.mean(y, axis=(2, 3), keepdims=True)
    var = jnp.mean((y - mu) ** 2, axis=(2, 3), keepdims=True)
    return (y - mu) * lax.rsqrt(var + EPS_NORM)


def block_ref(x, m, w1, b1, w2, b2, mxu_dtype=jnp.bfloat16):
    y, m1 = _pconv_ref(x, m, w1, b1, mxu_dtype)
    y = jnp.maximum(_inorm_ref(y), 0.0)
    y, m2 = _pconv_ref(y, m1, w2, b2, mxu_dtype)
    y = _inorm_ref(y)
    return x + y, m2


# ----------------------------------- main ----------------------------------- #

if __name__ == "__main__":
    N, C, H, W = 2, 4, 16, 16
    key = jax.random.PRNGKey(0)
    k1, k2, k3, k4, k5, k6 = jax.random.split(key, 6)

    x = jax.random.normal(k1, (N, C, H, W), jnp.float32)
    mask = (jax.random.uniform(k2, (N, 1, H, W)) > 0.3).astype(jnp.float32)

    fan_in = C * KH * KW
    scale = 1.0 / float(fan_in) ** 0.5
    w1 = jax.random.uniform(k3, (C, C, KH, KW), jnp.float32, -scale, scale)
    b1 = jax.random.uniform(k4, (C,), jnp.float32, -scale, scale)
    w2 = jax.random.uniform(k5, (C, C, KH, KW), jnp.float32, -scale, scale)
    b2 = jax.random.uniform(k6, (C,), jnp.float32, -scale, scale)

    y, m_out = partial_resblock(x, mask, w1, b1, w2, b2)
    y = jax.block_until_ready(y)
    m_out = jax.block_until_ready(m_out)

    # Reference quantizes the conv operands to the same bf16 the kernel feeds
    # the MXU (f32 accumulation in both); remaining deltas are accumulation
    # order, the E[y^2]-mu^2 variance form and the approx reciprocal, all well
    # inside the tolerance.
    y_exp, m_exp = block_ref(x, mask, w1, b1, w2, b2, mxu_dtype=jnp.bfloat16)
    assert jnp.allclose(y, y_exp, atol=2e-2, rtol=2e-2), \
        float(jnp.max(jnp.abs(y - y_exp)))
    assert jnp.allclose(m_out, m_exp, atol=1e-5)

    print("KERNEL_OK")
</pallas_src>

<mosaic_0001>
module attributes {stable_mosaic.version = 11 : i64} {
  func.func @partial_resblock_kernel(%arg0: i32, %arg1: memref<4x256xf32, #tpu.memory_space<vmem>>, %arg2: memref<1x256xf32, #tpu.memory_space<vmem>>, %arg3: memref<72x256xf32, #tpu.memory_space<vmem>>, %arg4: memref<8x72xbf16, #tpu.memory_space<vmem>>, %arg5: memref<4x1xf32, #tpu.memory_space<vmem>>, %arg6: memref<8x72xbf16, #tpu.memory_space<vmem>>, %arg7: memref<4x1xf32, #tpu.memory_space<vmem>>, %arg8: memref<4x256xf32, #tpu.memory_space<vmem>>, %arg9: memref<1x256xf32, #tpu.memory_space<vmem>>, %arg10: memref<72x256xbf16, #tpu.memory_space<vmem>>) attributes {dimension_semantics = [#tpu.dimension_semantics<parallel>], iteration_bounds = array<i64: 2>, scalar_prefetch = 0 : i64, scratch_operands = 1 : i64, tpu.core_type = #tpu.core_type<tc>, window_params = [{transform_indices = @transform_0, window_bounds = array<i64: 4, 256>}, {transform_indices = @transform_1, window_bounds = array<i64: 1, 256>}, {pipeline_mode = #tpu.pipeline_mode<synchronous>, transform_indices = @transform_2, window_bounds = array<i64: 72, 256>}, {pipeline_mode = #tpu.pipeline_mode<synchronous>, transform_indices = @transform_3, window_bounds = array<i64: 8, 72>}, {pipeline_mode = #tpu.pipeline_mode<synchronous>, transform_indices = @transform_4, window_bounds = array<i64: 4, 1>}, {pipeline_mode = #tpu.pipeline_mode<synchronous>, transform_indices = @transform_5, window_bounds = array<i64: 8, 72>}, {pipeline_mode = #tpu.pipeline_mode<synchronous>, transform_indices = @transform_6, window_bounds = array<i64: 4, 1>}, {transform_indices = @transform_7, window_bounds = array<i64: 4, 256>}, {transform_indices = @transform_8, window_bounds = array<i64: 1, 256>}]} {
    %c0 = arith.constant 0 : index
    %c0_0 = arith.constant 0 : index
    %0 = vector.load %arg4[%c0, %c0_0] : memref<8x72xbf16, #tpu.memory_space<vmem>>, vector<8x72xbf16>
    %c0_1 = arith.constant 0 : index
    %c0_2 = arith.constant 0 : index
    %1 = vector.load %arg6[%c0_1, %c0_2] : memref<8x72xbf16, #tpu.memory_space<vmem>>, vector<8x72xbf16>
    %c0_3 = arith.constant 0 : index
    %c0_4 = arith.constant 0 : index
    %2 = vector.load %arg5[%c0_3, %c0_4] : memref<4x1xf32, #tpu.memory_space<vmem>>, vector<4x1xf32>
    %c0_5 = arith.constant 0 : index
    %c0_6 = arith.constant 0 : index
    %3 = vector.load %arg7[%c0_5, %c0_6] : memref<4x1xf32, #tpu.memory_space<vmem>>, vector<4x1xf32>
    %c0_7 = arith.constant 0 : index
    %c0_8 = arith.constant 0 : index
    %4 = vector.load %arg1[%c0_7, %c0_8] : memref<4x256xf32, #tpu.memory_space<vmem>>, vector<4x256xf32>
    %c0_9 = arith.constant 0 : index
    %c0_10 = arith.constant 0 : index
    %5 = vector.load %arg2[%c0_9, %c0_10] : memref<1x256xf32, #tpu.memory_space<vmem>>, vector<1x256xf32>
    %cst = arith.constant 0.000000e+00 : f32
    %6 = vector.broadcast %cst : f32 to vector<3x256xf32>
    %7 = vector.broadcast %5 : vector<1x256xf32> to vector<4x256xf32>
    %8 = arith.mulf %4, %7 : vector<4x256xf32>
    %9 = tpu.concatenate %8, %5, %6 in 0 : vector<4x256xf32>, vector<1x256xf32>, vector<3x256xf32> -> vector<8x256xf32>
    %c17_i32 = arith.constant 17 : i32
    %10 = tpu.dynamic_rotate %9 by %c17_i32 dim 1 : vector<8x256xf32>, i32 -> vector<8x256xf32>
    %c0_11 = arith.constant 0 : index
    %c0_12 = arith.constant 0 : index
    %11 = vector.load %arg3[%c0_11, %c0_12] : memref<72x256xf32, #tpu.memory_space<vmem>>, vector<8x256xf32>
    %12 = arith.mulf %10, %11 : vector<8x256xf32>
    %13 = arith.truncf %12 : vector<8x256xf32> to vector<8x256xbf16>
    %c0_13 = arith.constant 0 : index
    %c0_14 = arith.constant 0 : index
    %14 = vector.load %arg10[%c0_13, %c0_14] : memref<72x256xbf16, #tpu.memory_space<vmem>>, vector<8x256xbf16>
    tpu.vector_store %arg10[%c0_13, %c0_14], %13 {strides = array<i32>} : memref<72x256xbf16, #tpu.memory_space<vmem>>, vector<8x256xbf16>,
    %c16_i32 = arith.constant 16 : i32
    %15 = tpu.dynamic_rotate %9 by %c16_i32 dim 1 : vector<8x256xf32>, i32 -> vector<8x256xf32>
    %c8 = arith.constant 8 : index
    %c0_15 = arith.constant 0 : index
    %16 = vector.load %arg3[%c8, %c0_15] : memref<72x256xf32, #tpu.memory_space<vmem>>, vector<8x256xf32>
    %17 = arith.mulf %15, %16 : vector<8x256xf32>
    %18 = arith.truncf %17 : vector<8x256xf32> to vector<8x256xbf16>
    %c8_16 = arith.constant 8 : index
    %c0_17 = arith.constant 0 : index
    %19 = vector.load %arg10[%c8_16, %c0_17] : memref<72x256xbf16, #tpu.memory_space<vmem>>, vector<8x256xbf16>
    tpu.vector_store %arg10[%c8_16, %c0_17], %18 {strides = array<i32>} : memref<72x256xbf16, #tpu.memory_space<vmem>>, vector<8x256xbf16>,
    %c15_i32 = arith.constant 15 : i32
    %20 = tpu.dynamic_rotate %9 by %c15_i32 dim 1 : vector<8x256xf32>, i32 -> vector<8x256xf32>
    %c16 = arith.constant 16 : index
    %c0_18 = arith.constant 0 : index
    %21 = vector.load %arg3[%c16, %c0_18] : memref<72x256xf32, #tpu.memory_space<vmem>>, vector<8x256xf32>
    %22 = arith.mulf %20, %21 : vector<8x256xf32>
    %23 = arith.truncf %22 : vector<8x256xf32> to vector<8x256xbf16>
    %c16_19 = arith.constant 16 : index
    %c0_20 = arith.constant 0 : index
    %24 = vector.load %arg10[%c16_19, %c0_20] : memref<72x256xbf16, #tpu.memory_space<vmem>>, vector<8x256xbf16>
    tpu.vector_store %arg10[%c16_19, %c0_20], %23 {strides = array<i32>} : memref<72x256xbf16, #tpu.memory_space<vmem>>, vector<8x256xbf16>,
    %c1_i32 = arith.constant 1 : i32
    %25 = tpu.dynamic_rotate %9 by %c1_i32 dim 1 : vector<8x256xf32>, i32 -> vector<8x256xf32>
    %c24 = arith.constant 24 : index
    %c0_21 = arith.constant 0 : index
    %26 = vector.load %arg3[%c24, %c0_21] : memref<72x256xf32, #tpu.memory_space<vmem>>, vector<8x256xf32>
    %27 = arith.mulf %25, %26 : vector<8x256xf32>
    %28 = arith.truncf %27 : vector<8x256xf32> to vector<8x256xbf16>
    %c24_22 = arith.constant 24 : index
    %c0_23 = arith.constant 0 : index
    %29 = vector.load %arg10[%c24_22, %c0_23] : memref<72x256xbf16, #tpu.memory_space<vmem>>, vector<8x256xbf16>
    tpu.vector_store %arg10[%c24_22, %c0_23], %28 {strides = array<i32>} : memref<72x256xbf16, #tpu.memory_space<vmem>>, vector<8x256xbf16>,
    %c32 = arith.constant 32 : index
    %c0_24 = arith.constant 0 : index
    %30 = vector.load %arg3[%c32, %c0_24] : memref<72x256xf32, #tpu.memory_space<vmem>>, vector<8x256xf32>
    %31 = arith.mulf %9, %30 : vector<8x256xf32>
    %32 = arith.truncf %31 : vector<8x256xf32> to vector<8x256xbf16>
    %c32_25 = arith.constant 32 : index
    %c0_26 = arith.constant 0 : index
    %33 = vector.load %arg10[%c32_25, %c0_26] : memref<72x256xbf16, #tpu.memory_space<vmem>>, vector<8x256xbf16>
    tpu.vector_store %arg10[%c32_25, %c0_26], %32 {strides = array<i32>} : memref<72x256xbf16, #tpu.memory_space<vmem>>, vector<8x256xbf16>,
    %c255_i32 = arith.constant 255 : i32
    %34 = tpu.dynamic_rotate %9 by %c255_i32 dim 1 : vector<8x256xf32>, i32 -> vector<8x256xf32>
    %c40 = arith.constant 40 : index
    %c0_27 = arith.constant 0 : index
    %35 = vector.load %arg3[%c40, %c0_27] : memref<72x256xf32, #tpu.memory_space<vmem>>, vector<8x256xf32>
    %36 = arith.mulf %34, %35 : vector<8x256xf32>
    %37 = arith.truncf %36 : vector<8x256xf32> to vector<8x256xbf16>
    %c40_28 = arith.constant 40 : index
    %c0_29 = arith.constant 0 : index
    %38 = vector.load %arg10[%c40_28, %c0_29] : memref<72x256xbf16, #tpu.memory_space<vmem>>, vector<8x256xbf16>
    tpu.vector_store %arg10[%c40_28, %c0_29], %37 {strides = array<i32>} : memref<72x256xbf16, #tpu.memory_space<vmem>>, vector<8x256xbf16>,
    %c241_i32 = arith.constant 241 : i32
    %39 = tpu.dynamic_rotate %9 by %c241_i32 dim 1 : vector<8x256xf32>, i32 -> vector<8x256xf32>
    %c48 = arith.constant 48 : index
    %c0_30 = arith.constant 0 : index
    %40 = vector.load %arg3[%c48, %c0_30] : memref<72x256xf32, #tpu.memory_space<vmem>>, vector<8x256xf32>
    %41 = arith.mulf %39, %40 : vector<8x256xf32>
    %42 = arith.truncf %41 : vector<8x256xf32> to vector<8x256xbf16>
    %c48_31 = arith.constant 48 : index
    %c0_32 = arith.constant 0 : index
    %43 = vector.load %arg10[%c48_31, %c0_32] : memref<72x256xbf16, #tpu.memory_space<vmem>>, vector<8x256xbf16>
    tpu.vector_store %arg10[%c48_31, %c0_32], %42 {strides = array<i32>} : memref<72x256xbf16, #tpu.memory_space<vmem>>, vector<8x256xbf16>,
    %c240_i32 = arith.constant 240 : i32
    %44 = tpu.dynamic_rotate %9 by %c240_i32 dim 1 : vector<8x256xf32>, i32 -> vector<8x256xf32>
    %c56 = arith.constant 56 : index
    %c0_33 = arith.constant 0 : index
    %45 = vector.load %arg3[%c56, %c0_33] : memref<72x256xf32, #tpu.memory_space<vmem>>, vector<8x256xf32>
    %46 = arith.mulf %44, %45 : vector<8x256xf32>
    %47 = arith.truncf %46 : vector<8x256xf32> to vector<8x256xbf16>
    %c56_34 = arith.constant 56 : index
    %c0_35 = arith.constant 0 : index
    %48 = vector.load %arg10[%c56_34, %c0_35] : memref<72x256xbf16, #tpu.memory_space<vmem>>, vector<8x256xbf16>
    tpu.vector_store %arg10[%c56_34, %c0_35], %47 {strides = array<i32>} : memref<72x256xbf16, #tpu.memory_space<vmem>>, vector<8x256xbf16>,
    %c239_i32 = arith.constant 239 : i32
    %49 = tpu.dynamic_rotate %9 by %c239_i32 dim 1 : vector<8x256xf32>, i32 -> vector<8x256xf32>
    %c64 = arith.constant 64 : index
    %c0_36 = arith.constant 0 : index
    %50 = vector.load %arg3[%c64, %c0_36] : memref<72x256xf32, #tpu.memory_space<vmem>>, vector<8x256xf32>
    %51 = arith.mulf %49, %50 : vector<8x256xf32>
    %52 = arith.truncf %51 : vector<8x256xf32> to vector<8x256xbf16>
    %c64_37 = arith.constant 64 : index
    %c0_38 = arith.constant 0 : index
    %53 = vector.load %arg10[%c64_37, %c0_38] : memref<72x256xbf16, #tpu.memory_space<vmem>>, vector<8x256xbf16>
    tpu.vector_store %arg10[%c64_37, %c0_38], %52 {strides = array<i32>} : memref<72x256xbf16, #tpu.memory_space<vmem>>, vector<8x256xbf16>,
    %c0_39 = arith.constant 0 : index
    %c0_40 = arith.constant 0 : index
    %54 = vector.load %arg10[%c0_39, %c0_40] : memref<72x256xbf16, #tpu.memory_space<vmem>>, vector<72x256xbf16>
    %cst_41 = arith.constant dense<0.000000e+00> : vector<8x256xf32>
    %55 = tpu.matmul %0, %54, %cst_41 {dimension_numbers = #tpu.dot_dimension_numbers<[1], [0], [0], [1], [0, 0, 1, 1], [], []>} : vector<8x72xbf16>, vector<72x256xbf16>, vector<8x256xf32> -> vector<8x256xf32>
    %56 = vector.extract_strided_slice %55 {offsets = [0, 0], sizes = [4, 256], strides = [1, 1]} : vector<8x256xf32> to vector<4x256xf32>
    %57 = vector.extract_strided_slice %55 {offsets = [4, 0], sizes = [1, 256], strides = [1, 1]} : vector<8x256xf32> to vector<1x256xf32>
    %cst_42 = arith.constant 0.000000e+00 : f32
    %cst_43 = arith.constant 1.000000e+00 : f32
    %58 = vector.broadcast %cst_42 : f32 to vector<1x256xf32>
    %59 = arith.maximumf %58, %57 : vector<1x256xf32>
    %60 = vector.broadcast %cst_43 : f32 to vector<1x256xf32>
    %61 = arith.minimumf %60, %59 : vector<1x256xf32>
    %cst_44 = arith.constant 9.99999993E-9 : f32
    %62 = vector.broadcast %cst_44 : f32 to vector<1x256xf32>
    %63 = arith.addf %57, %62 : vector<1x256xf32>
    %64 = tpu.reciprocal %63 {approx = true} : vector<1x256xf32> -> vector<1x256xf32>
    %cst_45 = arith.constant 9.000000e+00 : f32
    %65 = vector.broadcast %cst_45 : f32 to vector<1x256xf32>
    %66 = arith.mulf %65, %64 : vector<1x256xf32>
    %67 = arith.mulf %66, %61 : vector<1x256xf32>
    %68 = vector.broadcast %67 : vector<1x256xf32> to vector<4x256xf32>
    %69 = arith.mulf %56, %68 : vector<4x256xf32>
    %70 = vector.broadcast %2 : vector<4x1xf32> to vector<4x256xf32>
    %71 = arith.addf %69, %70 : vector<4x256xf32>
    %72 = vector.broadcast %61 : vector<1x256xf32> to vector<4x256xf32>
    %73 = arith.mulf %71, %72 : vector<4x256xf32>
    %74 = arith.mulf %73, %73 : vector<4x256xf32>
    %75 = tpu.concatenate %73, %74 in 0 : vector<4x256xf32>, vector<4x256xf32> -> vector<8x256xf32>
    %cst_46 = arith.constant dense<0.000000e+00> : vector<8xf32>
    %76 = vector.multi_reduction <add>, %75, %cst_46 [1] : vector<8x256xf32> to vector<8xf32>
    %77 = vector.shape_cast %76 : vector<8xf32> to vector<8x1xf32>
    %cst_47 = arith.constant 2.560000e+02 : f32
    %78 = vector.broadcast %cst_47 : f32 to vector<8x1xf32>
    %79 = arith.divf %77, %78 : vector<8x1xf32>
    %80 = vector.extract_strided_slice %79 {offsets = [0, 0], sizes = [4, 1], strides = [1, 1]} : vector<8x1xf32> to vector<4x1xf32>
    %81 = vector.extract_strided_slice %79 {offsets = [4, 0], sizes = [4, 1], strides = [1, 1]} : vector<8x1xf32> to vector<4x1xf32>
    %82 = arith.mulf %80, %80 : vector<4x1xf32>
    %83 = arith.subf %81, %82 : vector<4x1xf32>
    %84 = vector.broadcast %80 : vector<4x1xf32> to vector<4x256xf32>
    %85 = arith.subf %73, %84 : vector<4x256xf32>
    %cst_48 = arith.constant 9.99999974E-6 : f32
    %86 = vector.broadcast %cst_48 : f32 to vector<4x1xf32>
    %87 = arith.addf %83, %86 : vector<4x1xf32>
    %88 = math.rsqrt %87 : vector<4x1xf32>
    %89 = vector.broadcast %88 : vector<4x1xf32> to vector<4x256xf32>
    %90 = arith.mulf %85, %89 : vector<4x256xf32>
    %cst_49 = arith.constant 0.000000e+00 : f32
    %91 = vector.broadcast %cst_49 : f32 to vector<4x256xf32>
    %92 = arith.maximumf %90, %91 : vector<4x256xf32>
    %93 = vector.broadcast %61 : vector<1x256xf32> to vector<4x256xf32>
    %94 = arith.mulf %92, %93 : vector<4x256xf32>
    %95 = tpu.concatenate %94, %61, %6 in 0 : vector<4x256xf32>, vector<1x256xf32>, vector<3x256xf32> -> vector<8x256xf32>
    %c17_i32_50 = arith.constant 17 : i32
    %96 = tpu.dynamic_rotate %95 by %c17_i32_50 dim 1 : vector<8x256xf32>, i32 -> vector<8x256xf32>
    %c0_51 = arith.constant 0 : index
    %c0_52 = arith.constant 0 : index
    %97 = vector.load %arg3[%c0_51, %c0_52] : memref<72x256xf32, #tpu.memory_space<vmem>>, vector<8x256xf32>
    %98 = arith.mulf %96, %97 : vector<8x256xf32>
    %99 = arith.truncf %98 : vector<8x256xf32> to vector<8x256xbf16>
    %c0_53 = arith.constant 0 : index
    %c0_54 = arith.constant 0 : index
    %100 = vector.load %arg10[%c0_53, %c0_54] : memref<72x256xbf16, #tpu.memory_space<vmem>>, vector<8x256xbf16>
    tpu.vector_store %arg10[%c0_53, %c0_54], %99 {strides = array<i32>} : memref<72x256xbf16, #tpu.memory_space<vmem>>, vector<8x256xbf16>,
    %c16_i32_55 = arith.constant 16 : i32
    %101 = tpu.dynamic_rotate %95 by %c16_i32_55 dim 1 : vector<8x256xf32>, i32 -> vector<8x256xf32>
    %c8_56 = arith.constant 8 : index
    %c0_57 = arith.constant 0 : index
    %102 = vector.load %arg3[%c8_56, %c0_57] : memref<72x256xf32, #tpu.memory_space<vmem>>, vector<8x256xf32>
    %103 = arith.mulf %101, %102 : vector<8x256xf32>
    %104 = arith.truncf %103 : vector<8x256xf32> to vector<8x256xbf16>
    %c8_58 = arith.constant 8 : index
    %c0_59 = arith.constant 0 : index
    %105 = vector.load %arg10[%c8_58, %c0_59] : memref<72x256xbf16, #tpu.memory_space<vmem>>, vector<8x256xbf16>
    tpu.vector_store %arg10[%c8_58, %c0_59], %104 {strides = array<i32>} : memref<72x256xbf16, #tpu.memory_space<vmem>>, vector<8x256xbf16>,
    %c15_i32_60 = arith.constant 15 : i32
    %106 = tpu.dynamic_rotate %95 by %c15_i32_60 dim 1 : vector<8x256xf32>, i32 -> vector<8x256xf32>
    %c16_61 = arith.constant 16 : index
    %c0_62 = arith.constant 0 : index
    %107 = vector.load %arg3[%c16_61, %c0_62] : memref<72x256xf32, #tpu.memory_space<vmem>>, vector<8x256xf32>
    %108 = arith.mulf %106, %107 : vector<8x256xf32>
    %109 = arith.truncf %108 : vector<8x256xf32> to vector<8x256xbf16>
    %c16_63 = arith.constant 16 : index
    %c0_64 = arith.constant 0 : index
    %110 = vector.load %arg10[%c16_63, %c0_64] : memref<72x256xbf16, #tpu.memory_space<vmem>>, vector<8x256xbf16>
    tpu.vector_store %arg10[%c16_63, %c0_64], %109 {strides = array<i32>} : memref<72x256xbf16, #tpu.memory_space<vmem>>, vector<8x256xbf16>,
    %c1_i32_65 = arith.constant 1 : i32
    %111 = tpu.dynamic_rotate %95 by %c1_i32_65 dim 1 : vector<8x256xf32>, i32 -> vector<8x256xf32>
    %c24_66 = arith.constant 24 : index
    %c0_67 = arith.constant 0 : index
    %112 = vector.load %arg3[%c24_66, %c0_67] : memref<72x256xf32, #tpu.memory_space<vmem>>, vector<8x256xf32>
    %113 = arith.mulf %111, %112 : vector<8x256xf32>
    %114 = arith.truncf %113 : vector<8x256xf32> to vector<8x256xbf16>
    %c24_68 = arith.constant 24 : index
    %c0_69 = arith.constant 0 : index
    %115 = vector.load %arg10[%c24_68, %c0_69] : memref<72x256xbf16, #tpu.memory_space<vmem>>, vector<8x256xbf16>
    tpu.vector_store %arg10[%c24_68, %c0_69], %114 {strides = array<i32>} : memref<72x256xbf16, #tpu.memory_space<vmem>>, vector<8x256xbf16>,
    %c32_70 = arith.constant 32 : index
    %c0_71 = arith.constant 0 : index
    %116 = vector.load %arg3[%c32_70, %c0_71] : memref<72x256xf32, #tpu.memory_space<vmem>>, vector<8x256xf32>
    %117 = arith.mulf %95, %116 : vector<8x256xf32>
    %118 = arith.truncf %117 : vector<8x256xf32> to vector<8x256xbf16>
    %c32_72 = arith.constant 32 : index
    %c0_73 = arith.constant 0 : index
    %119 = vector.load %arg10[%c32_72, %c0_73] : memref<72x256xbf16, #tpu.memory_space<vmem>>, vector<8x256xbf16>
    tpu.vector_store %arg10[%c32_72, %c0_73], %118 {strides = array<i32>} : memref<72x256xbf16, #tpu.memory_space<vmem>>, vector<8x256xbf16>,
    %c255_i32_74 = arith.constant 255 : i32
    %120 = tpu.dynamic_rotate %95 by %c255_i32_74 dim 1 : vector<8x256xf32>, i32 -> vector<8x256xf32>
    %c40_75 = arith.constant 40 : index
    %c0_76 = arith.constant 0 : index
    %121 = vector.load %arg3[%c40_75, %c0_76] : memref<72x256xf32, #tpu.memory_space<vmem>>, vector<8x256xf32>
    %122 = arith.mulf %120, %121 : vector<8x256xf32>
    %123 = arith.truncf %122 : vector<8x256xf32> to vector<8x256xbf16>
    %c40_77 = arith.constant 40 : index
    %c0_78 = arith.constant 0 : index
    %124 = vector.load %arg10[%c40_77, %c0_78] : memref<72x256xbf16, #tpu.memory_space<vmem>>, vector<8x256xbf16>
    tpu.vector_store %arg10[%c40_77, %c0_78], %123 {strides = array<i32>} : memref<72x256xbf16, #tpu.memory_space<vmem>>, vector<8x256xbf16>,
    %c241_i32_79 = arith.constant 241 : i32
    %125 = tpu.dynamic_rotate %95 by %c241_i32_79 dim 1 : vector<8x256xf32>, i32 -> vector<8x256xf32>
    %c48_80 = arith.constant 48 : index
    %c0_81 = arith.constant 0 : index
    %126 = vector.load %arg3[%c48_80, %c0_81] : memref<72x256xf32, #tpu.memory_space<vmem>>, vector<8x256xf32>
    %127 = arith.mulf %125, %126 : vector<8x256xf32>
    %128 = arith.truncf %127 : vector<8x256xf32> to vector<8x256xbf16>
    %c48_82 = arith.constant 48 : index
    %c0_83 = arith.constant 0 : index
    %129 = vector.load %arg10[%c48_82, %c0_83] : memref<72x256xbf16, #tpu.memory_space<vmem>>, vector<8x256xbf16>
    tpu.vector_store %arg10[%c48_82, %c0_83], %128 {strides = array<i32>} : memref<72x256xbf16, #tpu.memory_space<vmem>>, vector<8x256xbf16>,
    %c240_i32_84 = arith.constant 240 : i32
    %130 = tpu.dynamic_rotate %95 by %c240_i32_84 dim 1 : vector<8x256xf32>, i32 -> vector<8x256xf32>
    %c56_85 = arith.constant 56 : index
    %c0_86 = arith.constant 0 : index
    %131 = vector.load %arg3[%c56_85, %c0_86] : memref<72x256xf32, #tpu.memory_space<vmem>>, vector<8x256xf32>
    %132 = arith.mulf %130, %131 : vector<8x256xf32>
    %133 = arith.truncf %132 : vector<8x256xf32> to vector<8x256xbf16>
    %c56_87 = arith.constant 56 : index
    %c0_88 = arith.constant 0 : index
    %134 = vector.load %arg10[%c56_87, %c0_88] : memref<72x256xbf16, #tpu.memory_space<vmem>>, vector<8x256xbf16>
    tpu.vector_store %arg10[%c56_87, %c0_88], %133 {strides = array<i32>} : memref<72x256xbf16, #tpu.memory_space<vmem>>, vector<8x256xbf16>,
    %c239_i32_89 = arith.constant 239 : i32
    %135 = tpu.dynamic_rotate %95 by %c239_i32_89 dim 1 : vector<8x256xf32>, i32 -> vector<8x256xf32>
    %c64_90 = arith.constant 64 : index
    %c0_91 = arith.constant 0 : index
    %136 = vector.load %arg3[%c64_90, %c0_91] : memref<72x256xf32, #tpu.memory_space<vmem>>, vector<8x256xf32>
    %137 = arith.mulf %135, %136 : vector<8x256xf32>
    %138 = arith.truncf %137 : vector<8x256xf32> to vector<8x256xbf16>
    %c64_92 = arith.constant 64 : index
    %c0_93 = arith.constant 0 : index
    %139 = vector.load %arg10[%c64_92, %c0_93] : memref<72x256xbf16, #tpu.memory_space<vmem>>, vector<8x256xbf16>
    tpu.vector_store %arg10[%c64_92, %c0_93], %138 {strides = array<i32>} : memref<72x256xbf16, #tpu.memory_space<vmem>>, vector<8x256xbf16>,
    %c0_94 = arith.constant 0 : index
    %c0_95 = arith.constant 0 : index
    %140 = vector.load %arg10[%c0_94, %c0_95] : memref<72x256xbf16, #tpu.memory_space<vmem>>, vector<72x256xbf16>
    %cst_96 = arith.constant dense<0.000000e+00> : vector<8x256xf32>
    %141 = tpu.matmul %1, %140, %cst_96 {dimension_numbers = #tpu.dot_dimension_numbers<[1], [0], [0], [1], [0, 0, 1, 1], [], []>} : vector<8x72xbf16>, vector<72x256xbf16>, vector<8x256xf32> -> vector<8x256xf32>
    %142 = vector.extract_strided_slice %141 {offsets = [0, 0], sizes = [4, 256], strides = [1, 1]} : vector<8x256xf32> to vector<4x256xf32>
    %143 = vector.extract_strided_slice %141 {offsets = [4, 0], sizes = [1, 256], strides = [1, 1]} : vector<8x256xf32> to vector<1x256xf32>
    %cst_97 = arith.constant 0.000000e+00 : f32
    %cst_98 = arith.constant 1.000000e+00 : f32
    %144 = vector.broadcast %cst_97 : f32 to vector<1x256xf32>
    %145 = arith.maximumf %144, %143 : vector<1x256xf32>
    %146 = vector.broadcast %cst_98 : f32 to vector<1x256xf32>
    %147 = arith.minimumf %146, %145 : vector<1x256xf32>
    %cst_99 = arith.constant 9.99999993E-9 : f32
    %148 = vector.broadcast %cst_99 : f32 to vector<1x256xf32>
    %149 = arith.addf %143, %148 : vector<1x256xf32>
    %150 = tpu.reciprocal %149 {approx = true} : vector<1x256xf32> -> vector<1x256xf32>
    %cst_100 = arith.constant 9.000000e+00 : f32
    %151 = vector.broadcast %cst_100 : f32 to vector<1x256xf32>
    %152 = arith.mulf %151, %150 : vector<1x256xf32>
    %153 = arith.mulf %152, %147 : vector<1x256xf32>
    %154 = vector.broadcast %153 : vector<1x256xf32> to vector<4x256xf32>
    %155 = arith.mulf %142, %154 : vector<4x256xf32>
    %156 = vector.broadcast %3 : vector<4x1xf32> to vector<4x256xf32>
    %157 = arith.addf %155, %156 : vector<4x256xf32>
    %158 = vector.broadcast %147 : vector<1x256xf32> to vector<4x256xf32>
    %159 = arith.mulf %157, %158 : vector<4x256xf32>
    %160 = arith.mulf %159, %159 : vector<4x256xf32>
    %161 = tpu.concatenate %159, %160 in 0 : vector<4x256xf32>, vector<4x256xf32> -> vector<8x256xf32>
    %cst_101 = arith.constant dense<0.000000e+00> : vector<8xf32>
    %162 = vector.multi_reduction <add>, %161, %cst_101 [1] : vector<8x256xf32> to vector<8xf32>
    %163 = vector.shape_cast %162 : vector<8xf32> to vector<8x1xf32>
    %cst_102 = arith.constant 2.560000e+02 : f32
    %164 = vector.broadcast %cst_102 : f32 to vector<8x1xf32>
    %165 = arith.divf %163, %164 : vector<8x1xf32>
    %166 = vector.extract_strided_slice %165 {offsets = [0, 0], sizes = [4, 1], strides = [1, 1]} : vector<8x1xf32> to vector<4x1xf32>
    %167 = vector.extract_strided_slice %165 {offsets = [4, 0], sizes = [4, 1], strides = [1, 1]} : vector<8x1xf32> to vector<4x1xf32>
    %168 = arith.mulf %166, %166 : vector<4x1xf32>
    %169 = arith.subf %167, %168 : vector<4x1xf32>
    %170 = vector.broadcast %166 : vector<4x1xf32> to vector<4x256xf32>
    %171 = arith.subf %159, %170 : vector<4x256xf32>
    %cst_103 = arith.constant 9.99999974E-6 : f32
    %172 = vector.broadcast %cst_103 : f32 to vector<4x1xf32>
    %173 = arith.addf %169, %172 : vector<4x1xf32>
    %174 = math.rsqrt %173 : vector<4x1xf32>
    %175 = vector.broadcast %174 : vector<4x1xf32> to vector<4x256xf32>
    %176 = arith.mulf %171, %175 : vector<4x256xf32>
    %177 = arith.addf %4, %176 : vector<4x256xf32>
    %c0_104 = arith.constant 0 : index
    %c0_105 = arith.constant 0 : index
    %178 = vector.load %arg8[%c0_104, %c0_105] : memref<4x256xf32, #tpu.memory_space<vmem>>, vector<4x256xf32>
    tpu.vector_store %arg8[%c0_104, %c0_105], %177 {strides = array<i32>} : memref<4x256xf32, #tpu.memory_space<vmem>>, vector<4x256xf32>,
    %c0_106 = arith.constant 0 : index
    %c0_107 = arith.constant 0 : index
    %179 = vector.load %arg9[%c0_106, %c0_107] : memref<1x256xf32, #tpu.memory_space<vmem>>, vector<1x256xf32>
    tpu.vector_store %arg9[%c0_106, %c0_107], %147 {strides = array<i32>} : memref<1x256xf32, #tpu.memory_space<vmem>>, vector<1x256xf32>,
    return
  }
  func.func @transform_0(%arg0: i32) -> (i32, i32) {
    %c0_i32 = arith.constant 0 : i32
    %c0_i32_0 = arith.constant 0 : i32
    return %c0_i32, %arg0 : i32, i32
  }
  func.func @transform_1(%arg0: i32) -> (i32, i32) {
    %c0_i32 = arith.constant 0 : i32
    %c0_i32_0 = arith.constant 0 : i32
    return %c0_i32, %arg0 : i32, i32
  }
  func.func @transform_2(%arg0: i32) -> (i32, i32) {
    %c0_i32 = arith.constant 0 : i32
    %c0_i32_0 = arith.constant 0 : i32
    %c0_i32_1 = arith.constant 0 : i32
    return %c0_i32, %c0_i32_0 : i32, i32
  }
  func.func @transform_3(%arg0: i32) -> (i32, i32) {
    %c0_i32 = arith.constant 0 : i32
    %c0_i32_0 = arith.constant 0 : i32
    %c0_i32_1 = arith.constant 0 : i32
    return %c0_i32, %c0_i32_0 : i32, i32
  }
  func.func @transform_4(%arg0: i32) -> (i32, i32) {
    %c0_i32 = arith.constant 0 : i32
    %c0_i32_0 = arith.constant 0 : i32
    %c0_i32_1 = arith.constant 0 : i32
    return %c0_i32, %c0_i32_0 : i32, i32
  }
  func.func @transform_5(%arg0: i32) -> (i32, i32) {
    %c0_i32 = arith.constant 0 : i32
    %c0_i32_0 = arith.constant 0 : i32
    %c0_i32_1 = arith.constant 0 : i32
    return %c0_i32, %c0_i32_0 : i32, i32
  }
  func.func @transform_6(%arg0: i32) -> (i32, i32) {
    %c0_i32 = arith.constant 0 : i32
    %c0_i32_0 = arith.constant 0 : i32
    %c0_i32_1 = arith.constant 0 : i32
    return %c0_i32, %c0_i32_0 : i32, i32
  }
  func.func @transform_7(%arg0: i32) -> (i32, i32) {
    %c0_i32 = arith.constant 0 : i32
    %c0_i32_0 = arith.constant 0 : i32
    return %c0_i32, %arg0 : i32, i32
  }
  func.func @transform_8(%arg0: i32) -> (i32, i32) {
    %c0_i32 = arith.constant 0 : i32
    %c0_i32_0 = arith.constant 0 : i32
    return %c0_i32, %arg0 : i32, i32
  }
}

</mosaic_0001>

<bundles_post_ra>
// kernel: tpu_custom_call.1
= control target key start
LH: loop header
LB: loop body
LE: loop exit
PB: predicated region body
PF: predicated region fallthrough
CT: control target
= control target key end

     0   :  { %14 = vsyncpa [#allocation4], 0  ;;  %s2183_s0 = inlined_call_operand.hbm [shape: f32[4,512], index: 0, kind: input, shape index: {}]   ;;  %s2184_s1 = inlined_call_operand.vmem [shape: f32[1,512], index: 1, kind: input, shape index: {}]   ;;  %s2185_s2 = inlined_call_operand.hbm [shape: f32[72,256], index: 2, kind: input, shape index: {}]   ;;  %s2186_s3 = inlined_call_operand.vmem [shape: bf16[8,72], index: 3, kind: input, shape index: {}]   ;;  %s2187_s4 = inlined_call_operand.vmem [shape: f32[4,1], index: 4, kind: input, shape index: {}]   ;;  %s2188_s5 = inlined_call_operand.vmem [shape: bf16[8,72], index: 5, kind: input, shape index: {}]   ;;  %s2189_s6 = inlined_call_operand.vmem [shape: f32[4,1], index: 6, kind: input, shape index: {}]   ;;  %s2190_s7 = inlined_call_operand.hbm [shape: f32[4,512], index: 7, kind: output, shape index: {0}]   ;;  %s2191_s8 = inlined_call_operand.hbm [shape: f32[1,512], index: 8, kind: output, shape index: {1}]  }
   0x1   :  { %16 = vsyncpa [#allocation4 + $0x1], 0 }
   0x2   :  { %17 = vsyncpa [#allocation7], 0 }
   0x3   :  { %18 = vsyncpa [#allocation5], 0 }
   0x4   :  { %20 = vsyncpa [#allocation5 + $0x1], 0 }
   0x5   :  { %21 = vsyncpa [#allocation10], 0 }
   0x6   :  { %23 = vsyncpa [#allocation10 + $0x1], 0  ;;  %s1697_s27 = smov 0   ;;  %s1699_s28 = smov 0  }
   0x7   :  { %s1701_s29 = smov 0   ;;  %s1703_s30 = smov 0  }
   0x8 LB: > { %s1718_s9 = sadd.s32 4294967295, %s1634_s30   ;;  %s1282_s10 = sadd.s32 4294967294, %s1634_s30   ;;  %s1634_s30 = sphi %s1703_s30, %s2211_s30   ;;  %s1630_s29 = sphi %s1701_s29, %s2214_s29   ;;  %s1626_s28 = sphi %s1699_s28, %s2213_s28   ;;  %s1622_s27 = sphi %s1697_s27, %s2212_s27  }
   0x9   : > { %p49_p0 = scmp.ne.s32.totalorder %s1626_s28, %s1622_s27  ;;  %p2192_p1 = scmp.eq.s32.totalorder %s1718_s9, 0 }
   0xa   : > { %p210_p3 = scmp.eq.s32.totalorder %s1282_s10, 1  ;;  %p1283_p5 = scmp.ge.s32.totalorder %s1634_s30, 1 }
   0xb   : > { %p1727_p4 = por %p2192_p1, %p49_p0  ;;  %p243_p7 = scmp.lt.s32.totalorder %s1634_s30, 3 }
   0xc   : > { %p1732_p6 = por %p210_p3, %p49_p0  ;;  %s1636_s14 = smov [#allocation6]  }
   0xd   : > { %s2197_s11 = scalar_select %p1727_p4, 1, 0 }
   0xe   : > { %s2198_s12 = scalar_select %p1732_p6, 1, 0 }
   0xf   : > { %p1737_p8 = pnand %p1283_p5, %p243_p7  ;;  %s255_s15 = sshll.u32 %s1636_s14, 4  ;;  %s1741_s15 = int_to_ptr.vmem [resolvable:$true] %s255_s15 }
  0x10   : > { %s1753_s17 = sadd.s32 1, %s1634_s30   ;;  %s36_s18 = sadd.s32 1, %s1630_s29 }
  0x11   : > { %s2199_s13 = scalar_select %p1737_p8, 1, 0 }
  0x12   : > { %p1396_p9 = pneg %p1737_p8  ;;  %2201 = sst [smem:[#allocation15_spill]] %s1753_s17 }
  0x13   : > { %s33_s19 = ssub.s32 %s1634_s30, %s1753_s17  ;;  %s1474_s22 = scalar_lea.hbm %s2185_s2, 2304 }
  0x14   : > { %p1748_p11 = pnand %p1396_p9, %p2192_p1  ;;  %p1475_p12 = scmp.ne.s32.totalorder %s2185_s2, %s1474_s22 }
  0x15   : > { %p1481_p5 = scmp.lt.u32.totalorder %s1474_s22, %s2185_s2 }
  0x16   : > { %p1476_p13 = pneg %p1748_p11 }
  0x18   : > { %p1477_p0 = pnand %p1476_p13, %p1475_p12 }
  0x1a   : > { %p1478_p3 = pneg %p1477_p0 }
  0x1c   : > { %p1483_p7 = pnand %p1481_p5, %p1478_p3 }
  0x1e   : > { %1486 = shalt.err (!%p1483_p7)
}
  0x1f   : > { %s1487_s10 = scalar_lea.vmem %s1741_s15, 2304  ;;  %p1495_p2 = scmp.lt.s32.totalorder %s1741_s15, %s1741_s15 }
  0x20   : > { %p1488_p9 = scmp.ne.s32.totalorder %s1741_s15, %s1487_s10  ;;  %p1496_p6 = scmp.lt.s32.totalorder %s1487_s10, %s1487_s10 }
  0x22   : > { %p1490_p10 = pnand %p1488_p9, %p1476_p13  ;;  %p1497_p4 = por %p1496_p6, %p1495_p2 }
  0x24   : > { %p1491_p1 = pneg %p1490_p10 }
  0x26   : > { %p1498_p8 = pnand %p1497_p4, %p1491_p1 }
  0x28   : > { %1501 = shalt.err (!%p1498_p8)
}
  0x29   : > { %s1637_s14 = smov 256   ;;  %s1638_s20 = smov 16  }
  0x2a   : > { %1399 = dma.hbm_to_vmem [thread:$0]  (!%p1748_p11), %s2185_s2, 2304, %s1741_s15, [#allocation7], %s1637_s14, %s1637_s14, %s1638_s20  }
  0x2b   : > { %p34_p2 = scmp.eq.s32.totalorder %s33_s19, 0  ;;  %p43_p1 = scmp.ne.s32.totalorder %s1630_s29, %s1626_s28 }
  0x2c   : > { %p44_p4 = scmp.eq.s32.totalorder %s1634_s30, 0  ;;  %p1412_p6 = scmp.lt.s32.totalorder %s1634_s30, 2 }
  0x2d   : > { %s1784_s23 = scalar_select %p34_p2, %s1630_s29, %s36_s18  }
  0x2e   : > { %p45_p8 = por %p44_p4, %p43_p1  ;;  %p2202_p10 = scmp.eq.s32.totalorder %s1718_s9, 1 }
  0x2f   : > { %s281_s25 = sand.u32 1, %s1630_s29   ;;  %s1345_s26 = sshll.u32 %s1634_s30, 7 }
  0x30   : > { %p1788_p12 = por %p2202_p10, %p43_p1  ;;  %s1286_s10 = sshll.u32 %s281_s25, 3 }
  0x31   : > { %s1797_s21 = scalar_lea.hbm %s2183_s0, %s1345_s26  ;;  %s285_s15 = scalar_lea.vmem [#allocation3], %s1286_s10 }
  0x32   : > { %s293_s18 = sshll.u32 %s285_s15, 4  ;;  %p1799_p11 = pnand %p1412_p6, %p45_p8  ;;  %s1803_s18 = int_to_ptr.vmem [resolvable:$true] %s293_s18 }
  0x33   : > { %s282_s14 = scalar_lea.sflag [#allocation4], %s281_s25  ;;  %s1502_s20 = scalar_lea.hbm %s1797_s21, 128 }
  0x34   : > { %p1503_p13 = scmp.ne.s32.totalorder %s1797_s21, %s1502_s20  ;;  %p1504_p0 = pneg %p1799_p11 }
  0x35   : > { %s1507_s26 = scalar_lea.hbm %s2183_s0, 256  ;;  %p1508_p7 = scmp.lt.u32.totalorder %s1797_s21, %s2183_s0 }
  0x36   : > { %p1505_p3 = pnand %p1504_p0, %p1503_p13  ;;  %p1509_p9 = scmp.lt.u32.totalorder %s1507_s26, %s1502_s20 }
  0x37   : > { %p1511_p1 = scmp.lt.u32.totalorder %s1502_s20, %s1797_s21 }
  0x38   : > { %p1506_p5 = pneg %p1505_p3  ;;  %p1510_p2 = por %p1509_p9, %p1508_p7 }
  0x3a   : > { %p1512_p4 = por %p1511_p1, %p1510_p2 }
  0x3c   : > { %p1513_p6 = pnand %p1512_p4, %p1506_p5 }
  0x3e   : > { %1516 = shalt.err (!%p1513_p6)
}
  0x3f   : > { %s1517_s25 = scalar_lea.vmem %s1803_s18, 128  ;;  %s1639_s15 = smov [#allocation3]  }
  0x40   : > { %p1518_p8 = scmp.ne.s32.totalorder %s1803_s18, %s1517_s25  ;;  %s1522_s17 = sshll.u32 %s1639_s15, 4  ;;  %s1523_s17 = int_to_ptr.vmem [resolvable:$false] %s1522_s17 }
  0x41   : > { %s1524_s22 = scalar_lea.vmem %s1523_s17, 256  ;;  %p1525_p3 = scmp.lt.s32.totalorder %s1803_s18, %s1523_s17 }
  0x42   : > { %p1520_p10 = pnand %p1518_p8, %p1504_p0  ;;  %p1526_p7 = scmp.lt.s32.totalorder %s1524_s22, %s1517_s25 }
  0x44   : > { %p1521_p13 = pneg %p1520_p10  ;;  %p1527_p9 = por %p1526_p7, %p1525_p3 }
  0x46   : > { %p1528_p2 = pnand %p1527_p9, %p1521_p13 }
  0x48   : > { %1531 = shalt.err (!%p1528_p2)
}
  0x49   : > { %1403 = dma.hbm_to_vmem [thread:$0]  (!%p1799_p11), %s1797_s21, 128, %s1803_s18, %s282_s14  }
  0x4a   : > { %p2205_p5 = scmp.ne.s32.totalorder %s2199_s13, 0 }
  0x4b   : > { %s1833_s20 = sand.u32 (!%p2205_p5), 1, %s1626_s28   ;;  %p2206_p0 = scmp.ne.s32.totalorder (!%p2205_p5), %s2197_s11, 0 }
  0x4c   : > { %310 = sbr.rel (%p2205_p5) target bundleno = 1529 (0x5f9), region = 48  ;;  %s1290_s26 = sshll.u32 (!%p2205_p5), %s1833_s20, 3 }
  0x4d   : > { %s313_s10 = scalar_lea.sflag (!%p2205_p5), [#allocation4], %s1833_s20  ;;  %s316_s16 = scalar_lea.vmem (!%p2205_p5), [#allocation3], %s1290_s26 }
  0x53   : > { %1605 = dma.done.wait (%p2206_p0), %s313_s10, 128  }
  0x54   : > { %1607 = vsyncadd (%p2206_p0), %s313_s10, 4294967168  ;;  %p2207_p11 = scmp.eq.s32.totalorder %s1718_s9, 0 }
  0x56   : > { %1609 = dma.done.wait (%p2207_p11), [#allocation7], 2304   ;;  %p2208_p1 = pmov %p2207_p11 }
  0x57   : > { %s1294_s13 = sshll.u32 %s1718_s9, 1  ;;  %v378_v0 = vlaneseq  ;;  %v1856_v7 = vld [vmem:[%s316_s16] sm:$0xff]  ;;  %vm394_vm0 = vcmask 1043456   ;;  %vm397_vm1 = vcmask 1044480   ;;  %s1640_s19 = smov 16   ;;  %v1646_v15 = vmov 0  }
  0x58   : > { %1611 = vsyncadd (%p2208_p1), [#allocation7], 4294964992  ;;  %p364_p4 = scmp.lt.s32.totalorder %s1294_s13, 3  ;;  %s1641_s14 = smov 17   ;;  %671 = vmatprep.mubr.bf16.mxu0 %v1646_v15  ;;  %1460 = vset.pattern.permute.xlu0 %v1646_v15  ;;  %v373_v16 = vld [vmem:[%s2187_s4] sm:$0xf] }
  0x59   : > { %v1849_v1 = vshrl.u32 %v378_v0, 7  ;;  %s1642_s25 = smov 15   ;;  %s1643_s15 = smov 1   ;;  %1019 = vmatprep.mubr.bf16.mxu1 %v1646_v15  ;;  %1461 = vset.pattern.permute.xlu1 %v1646_v15  ;;  %v1903_v19 = vand.u32 127, %v378_v0  ;;  %v1906_v24 = vld [vmem:[#allocation6 + $0x10] sm:$0xff]  ;;  %v1912_v27 = vld [vmem:[#allocation6 + $0x18] sm:$0xff] }
  0x5a   : > { %s2216_s13 = smov (!%p364_p4, %s1294_s13), 3  ;;  %s1644_s17 = smov 127   ;;  %v1917_v28 = vld [vmem:[#allocation6 + $0x38] sm:$0xff]  ;;  %v1919_v29 = vld [vmem:[#allocation6] sm:$0xff]  ;;  %v1921_v30 = vld [vmem:[#allocation6 + $0x8] sm:$0xff]  ;;  %vm629_vm10 = vcmask 588800  }
  0x5b   : > { %v380_v2 = vsub.s32 0, %v1849_v1  ;;  %v384_v3 = vsub.s32 1, %v1849_v1  ;;  %s366_s18 = scalar_lea.vmem %s2184_s1, %s2216_s13  ;;  %s1645_s22 = smov 113   ;;  %vm426_vm2 = vcmp.lt.s32.totalorder %v1903_v19, 16  ;;  %vm446_vm3 = vcmp.lt.s32.totalorder %v1903_v19, 15  ;;  %v1926_v35 = vld [vmem:[#allocation6 + $0x28] sm:$0xff] }
  0x5c   : > { %v376_v4 = vld [vmem:[%s366_s18] sm:$0x3]  ;;  %s1647_s10 = smov 112   ;;  %s1648_s16 = smov 111   ;;  %vm466_vm4 = vcmp.lt.s32.totalorder %v1903_v19, 1  ;;  %vm406_vm5 = vcmp.lt.s32.totalorder %v1903_v19, 17 }
  0x5d   : > { %v381_v5 = vrot.slane %v376_v4, %v380_v2  ;;  %v385_v6 = vrot.slane %v376_v4, %v384_v3  ;;  %vm499_vm6 = vcmp.lt.s32.totalorder %v1903_v19, 127  ;;  %v1936_v40 = vld [vmem:[#allocation6 + $0x30] sm:$0xff]  ;;  %v1943_v45 = vld [vmem:[#allocation6 + $0x58] sm:$0xff]  ;;  %v1945_v46 = vld [vmem:[#allocation6 + $0x48] sm:$0xff]  ;;  %vm519_vm7 = vcmp.lt.s32.totalorder %v1903_v19, 113  ;;  %s1133_s18 = scalar_lea.sflag [#allocation10], %s1833_s20 }
  0x5e   : > { %v1947_v47 = vld [vmem:[#allocation6 + $0x20] sm:$0xff]  ;;  %v1955_v56 = vld [vmem:[#allocation6 + $0x50] sm:$0xff]  ;;  %vm539_vm8 = vcmp.lt.s32.totalorder %v1903_v19, 112  ;;  %vm559_vm9 = vcmp.lt.s32.totalorder %v1903_v19, 111  ;;  %v1649_v19 = vmov 1966171168  }
  0x5f   : > { %v386_v8 = vcombine.low %v381_v5, %v385_v6  ;;  %v1962_v61 = vld [vmem:[#allocation6 + $0x40] sm:$0xff]  ;;  %vm1124_vm11 = vcmp.lt.s32.totalorder %v378_v0, 256  ;;  %s1650_s13 = smov [#allocation9]  }
  0x61   : > { %v388_v9 = vmul.f32 %v386_v8, %v1856_v7 }
  0x63   : > { %v395_v10 = vsel %vm394_vm0, %v388_v9, %v381_v5  ;;  %v390_v11 = vcombine.high %v388_v9, %v388_v9  ;;  %v1972_v9 = vld [vmem:[#allocation6 + $0x68] sm:$0xff] }
  0x64   : > { %v1861_v12 = vsel %vm397_vm1, %v395_v10, 0.0 }
  0x65   : > { %422 = vrot.lane.b32.xlu1 %v1861_v12, %s1640_s19  ;;  %400 = vrot.lane.b32.xlu0 %v1861_v12, %s1641_s14  ;;  %v396_v13 = vsel %vm394_vm0, %v390_v11, %v385_v6  ;;  %v484_v5 = vmul.f32 %v1962_v61, %v1861_v12  ;;  %v1969_v6 = vld [vmem:[#allocation6 + $0x60] sm:$0xff] }
  0x66   : > { %v1869_v14 = vsel %vm397_vm1, %v396_v13, 0.0  ;;  %v1978_v13 = vld [vmem:[#allocation6 + $0x70] sm:$0xff] }
  0x67   : > { %v485_v60 = vmul.f32 %v1945_v46, %v1869_v14 }
  0x69   : > { %442 = vrot.lane.b32.xlu0 %v1861_v12, %s1642_s25  ;;  %424 = vrot.lane.b32.xlu1 %v1869_v14, %s1640_s19 }
  0x6d   : > { %462 = vrot.lane.b32.xlu0 %v1861_v12, %s1643_s15  ;;  %444 = vrot.lane.b32.xlu1 %v1869_v14, %s1642_s25 }
  0x71   : > { %464 = vrot.lane.b32.xlu1 %v1869_v14, %s1643_s15  ;;  %402 = vrot.lane.b32.xlu0 %v1869_v14, %s1641_s14 }
  0x75   : > { %497 = vrot.lane.b32.xlu1 %v1869_v14, %s1644_s17  ;;  %495 = vrot.lane.b32.xlu0 %v1861_v12, %s1644_s17 }
  0x79   : > { %517 = vrot.lane.b32.xlu1 %v1869_v14, %s1645_s22  ;;  %515 = vrot.lane.b32.xlu0 %v1861_v12, %s1645_s22 }
  0x7d   : > { %537 = vrot.lane.b32.xlu1 %v1869_v14, %s1647_s10  ;;  %535 = vrot.lane.b32.xlu0 %v1861_v12, %s1647_s10 }
  0x81   : > { %557 = vrot.lane.b32.xlu1 %v1869_v14, %s1648_s16  ;;  %555 = vrot.lane.b32.xlu0 %v1861_v12, %s1648_s16  ;;  %v1980_v14 = vld [vmem:[#allocation6 + $0x78] sm:$0xff] }
  0x85   : > { %704 = vperm.xlu0 %1460, %v373_v16  }
  0xd7   : > { %v423_v17 = vpop.permute.xlu1 %422  ;;  %v401_v18 = vpop.permute.xlu0 %400 }
  0xdb   : > { %v443_v20 = vpop.permute.xlu0 %442  ;;  %v425_v21 = vpop.permute.xlu1 %424 }
  0xdc   : > { %v427_v25 = vsel %vm426_vm2, %v423_v17, %v425_v21  ;;  %v428_v26 = vsel %vm426_vm2, %v425_v21, %v423_v17 }
  0xdd   : > { %v431_v31 = vmul.f32 %v1906_v24, %v428_v26  ;;  %v432_v34 = vmul.f32 %v1912_v27, %v427_v25  ;;  %v1991_v25 = vld [vmem:[#allocation6 + $0x80] sm:$0xff]  ;;  %v1993_v26 = vld [vmem:[#allocation6 + $0x88] sm:$0xff] }
  0xdf   : > { %v463_v22 = vpop.permute.xlu0 %462  ;;  %v445_v23 = vpop.permute.xlu1 %444 }
  0xe0   : > { %v447_v36 = vsel %vm446_vm3, %v443_v20, %v445_v23  ;;  %v448_v48 = vsel %vm446_vm3, %v445_v23, %v443_v20 }
  0xe1   : > { %v452_v49 = vmul.f32 %v1926_v35, %v447_v36  ;;  %v451_v62 = vmul.f32 %v1947_v47, %v448_v48 }
  0xe3   : > { %v465_v32 = vpop.permute.xlu1 %464  ;;  %v403_v33 = vpop.permute.xlu0 %402 }
  0xe4   : > { %v467_v37 = vsel %vm466_vm4, %v463_v22, %v465_v32  ;;  %v407_v38 = vsel %vm406_vm5, %v401_v18, %v403_v33  ;;  %v408_v39 = vsel %vm406_vm5, %v403_v33, %v401_v18  ;;  %v468_v41 = vsel %vm466_vm4, %v465_v32, %v463_v22 }
  0xe5   : > { %v472_v42 = vmul.f32 %v1917_v28, %v467_v37  ;;  %v411_v43 = vmul.f32 %v1919_v29, %v408_v39  ;;  %v412_v44 = vmul.f32 %v1921_v30, %v407_v38  ;;  %v471_v54 = vmul.f32 %v1936_v40, %v468_v41 }
  0xe7   : > { %v498_v50 = vpop.permute.xlu1 %497  ;;  %v496_v51 = vpop.permute.xlu0 %495  ;;  %v1367_v52 = vpack.c.bf16 %v432_v34, %v412_v44  ;;  %v1366_v53 = vpack.c.bf16 %v431_v31, %v411_v43  ;;  %v1369_v59 = vpack.c.bf16 %v472_v42, %v452_v49  ;;  %v1368_v4 = vpack.c.bf16 %v471_v54, %v451_v62  ;;  %v371_v44 = vld [vmem:[%s2186_s3] sm:$0xf] }
  0xe8   : > { %v501_v55 = vsel %vm499_vm6, %v498_v50, %v496_v51  ;;  %v500_v57 = vsel %vm499_vm6, %v496_v51, %v498_v50 }
  0xe9   : > { %v505_v58 = vmul.f32 %v1943_v45, %v501_v55  ;;  %639 = vmatprep.subr.bf16.mxu0 %v1367_v52  ;;  %v504_v3 = vmul.f32 %v1955_v56, %v500_v57 }
  0xea   : > { %640 = vmatpush1.bf16.msra.mxu0 %v1366_v53 }
  0xeb   : > { %v518_v63 = vpop.permute.xlu1 %517  ;;  %641 = vmatprep.subr.bf16.mxu0 %v1369_v59  ;;  %v516_v2 = vpop.permute.xlu0 %515  ;;  %v1371_v8 = vpack.c.bf16 %v505_v58, %v485_v60  ;;  %v1370_v18 = vpack.c.bf16 %v504_v3, %v484_v5  ;;  %v2008_v3 = vsub.s32 4, %v1849_v1 }
  0xec   : > { %v520_v10 = vsel %vm519_vm7, %v516_v2, %v518_v63  ;;  %v521_v11 = vsel %vm519_vm7, %v518_v63, %v516_v2 }
  0xed   : > { %v524_v20 = vmul.f32 %v1969_v6, %v520_v10  ;;  %v525_v21 = vmul.f32 %v1972_v9, %v521_v11 }
  0xee   : > { %642 = vmatpush1.bf16.msra.mxu0 %v1368_v4 }
  0xef   : > { %v538_v15 = vpop.permute.xlu1 %537  ;;  %v536_v12 = vpop.permute.xlu0 %535  ;;  %643 = vmatprep.subr.bf16.mxu0 %v1371_v8 }
  0xf0   : > { %v540_v16 = vsel %vm539_vm8, %v536_v12, %v538_v15  ;;  %v541_v17 = vsel %vm539_vm8, %v538_v15, %v536_v12 }
  0xf1   : > { %v544_v22 = vmul.f32 %v1978_v13, %v540_v16  ;;  %v545_v23 = vmul.f32 %v1980_v14, %v541_v17 }
  0xf2   : > { %644 = vmatpush1.bf16.msra.mxu0 %v1370_v18 }
  0xf3   : > { %v558_v31 = vpop.permute.xlu1 %557  ;;  %v556_v32 = vpop.permute.xlu0 %555  ;;  %v1373_v33 = vpack.c.bf16 %v545_v23, %v525_v21  ;;  %v1372_v34 = vpack.c.bf16 %v544_v22, %v524_v20 }
  0xf4   : > { %v560_v36 = vsel %vm559_vm9, %v556_v32, %v558_v31  ;;  %v561_v37 = vsel %vm559_vm9, %v558_v31, %v556_v32 }
  0xf5   : > { %v564_v38 = vmul.f32 %v1991_v25, %v560_v36  ;;  %v565_v39 = vmul.f32 %v1993_v26, %v561_v37  ;;  %645 = vmatprep.subr.bf16.mxu0 %v1373_v33 }
  0xf6   : > { %646 = vmatpush1.bf16.msra.mxu0 %v1372_v34 }
  0xf7   : > { %v1374_v41 = vpack.c.bf16 %v564_v38, %v564_v38  ;;  %v1375_v42 = vpack.c.bf16 %v565_v39, %v565_v39 }
  0xf9   : > { %1314 = vmatprep.subr.msk.bf16.mxu0 %vm394_vm0, %v1375_v42  ;;  %v634_v43 = vsel %vm394_vm0, %v1374_v41, 0 }
  0xfa   : > { %648 = vmatpush1.bf16.msra.mxu0 %v634_v43 }
  0xfd   : > { %1315 = vmatmul.mubr.msk.bf16.vlgmr.msra.gmra.mrb[0].mxu0 %vm629_vm10, %v371_v44 }
 0x104   : > { %v705_v10 = vpop.permute.xlu0 %704 }
 0x1d0   : > { %v673_v48 = vpop.f32.mrb[0].mxu0 }
 0x1d1   : > { %v684_v49 = vadd.f32 1e-08, %v673_v48  ;;  %v675_v50 = vpop.f32.mrb[1].mxu0  ;;  %v680_v54 = vmax.f32 %v673_v48, 0.0 }
 0x1d2   : > { %v685_v51 = vadd.f32 1e-08, %v675_v50  ;;  %v677_v52 = vpop.f32.mrb[2].mxu0  ;;  %v681_v55 = vmax.f32 %v675_v50, 0.0 }
 0x1d3   : > { %1462 = vrcp.f32 %v684_v49  ;;  %v678_v53 = vpop.f32.mrb[3].mxu0  ;;  %v682_v59 = vmin.f32 %v680_v54, 1.0 }
 0x1d4   : > { %1464 = vrcp.f32 %v685_v51  ;;  %v683_v62 = vmin.f32 %v681_v55, 1.0 }
 0x1d5   : > { %v712_v16 = vrot.slane %v682_v59, %v2008_v3 }
 0x1d6   : > { %v716_v18 = vrot.slane %v683_v62, %v2008_v3 }
 0x1dd   : > { %v1463_v57 = vpop.eup %1462 }
 0x1de   : > { %v1465_v58 = vpop.eup %1464  ;;  %v688_v60 = vmul.f32 9.0, %v1463_v57 }
 0x1df   : > { %v689_v63 = vmul.f32 9.0, %v1465_v58 }
 0x1e0   : > { %v690_v2 = vmul.f32 %v688_v60, %v682_v59 }
 0x1e1   : > { %v691_v4 = vmul.f32 %v689_v63, %v683_v62 }
 0x1e2   : > { %v695_v5 = vrot.slane %v690_v2, %v2008_v3 }
 0x1e3   : > { %v699_v8 = vrot.slane %v691_v4, %v2008_v3 }
 0x1e4   : > { %v700_v11 = vmul.f32 %v695_v5, %v673_v48 }
 0x1e5   : > { %v701_v15 = vmul.f32 %v699_v8, %v675_v50 }
 0x1e6   : > { %v707_v12 = vadd.f32 %v705_v10, %v700_v11 }
 0x1e7   : > { %v708_v17 = vadd.f32 %v705_v10, %v701_v15 }
 0x1e8   : > { %v717_v20 = vmul.f32 %v712_v16, %v707_v12 }
 0x1e9   : > { %v718_v21 = vmul.f32 %v716_v18, %v708_v17 }
 0x1ea   : > { %v719_v22 = vmul.f32 %v717_v20, %v717_v20 }
 0x1eb   : > { %v720_v23 = vmul.f32 %v718_v21, %v718_v21 }
 0x1ec   : > { %v723_v31 = vrot.slane %v719_v22, 4 }
 0x1ed   : > { %v724_v32 = vrot.slane %v720_v23, 4 }
 0x1ee   : > { %v727_v33 = vsel %vm394_vm0, %v717_v20, %v723_v31 }
 0x1ef   : > { %v728_v34 = vsel %vm394_vm0, %v718_v21, %v724_v32 }
 0x1f0   : > { %v729_v36 = vadd.f32 %v728_v34, %v727_v33 }
 0x1f2   : > { %730 = vadd.xlane.f32.xlu1 %v729_v36 }
 0x27f   : > { %v731_v37 = vpop.xlane.xlu1 %730 }
 0x280   : > { %v733_v38 = vmul.f32 0.00390625, %v731_v37 }
 0x282   : > { %v734_v39 = vmul.f32 %v733_v38, %v733_v38  ;;  %v739_v49 = vsub.f32 %v717_v20, %v733_v38  ;;  %v740_v50 = vsub.f32 %v718_v21, %v733_v38 }
 0x284   : > { %v736_v41 = vrot.slane %v734_v39, 4 }
 0x286   : > { %v738_v42 = vsub.f32 %v733_v38, %v736_v41 }
 0x288   : > { %v741_v43 = vadd.f32 1e-05, %v738_v42 }
 0x28a   : > { %1466 = vrsqrt.f32 %v741_v43 }
 0x294   : > { %v1467_v44 = vpop.eup %1466 }
 0x295   : > { %745 = vperm.xlu0 %1460, %v1467_v44  }
 0x314   : > { %v746_v48 = vpop.permute.xlu0 %745 }
 0x315   : > { %v747_v51 = vrot.slane %v746_v48, 4 }
 0x317   : > { %v749_v52 = vmul.f32 %v747_v51, %v739_v49  ;;  %v750_v53 = vmul.f32 %v747_v51, %v740_v50 }
 0x319   : > { %v751_v54 = vmax.f32 %v749_v52, 0.0  ;;  %v752_v55 = vmax.f32 %v750_v53, 0.0 }
 0x31b   : > { %v753_v57 = vmul.f32 %v751_v54, %v712_v16  ;;  %v754_v58 = vmul.f32 %v752_v55, %v716_v18 }
 0x31d   : > { %v755_v60 = vsel %vm394_vm0, %v753_v57, %v682_v59  ;;  %v756_v63 = vsel %vm394_vm0, %v754_v58, %v683_v62  ;;  %v374_v59 = vld [vmem:[%s2189_s6] sm:$0xf] }
 0x31e   : > { %v757_v2 = vsel %vm397_vm1, %v755_v60, 0.0  ;;  %v758_v4 = vsel %vm397_vm1, %v756_v63, 0.0 }
 0x31f   : > { %818 = vrot.lane.b32.xlu1 %v758_v4, %s1643_s15  ;;  %759 = vrot.lane.b32.xlu0 %v757_v2, %s1641_s14 }
 0x323   : > { %886 = vrot.lane.b32.xlu1 %v757_v2, %s1647_s10  ;;  %761 = vrot.lane.b32.xlu0 %v758_v4, %s1641_s14 }
 0x327   : > { %905 = vrot.lane.b32.xlu1 %v757_v2, %s1648_s16  ;;  %778 = vrot.lane.b32.xlu0 %v757_v2, %s1640_s19 }
 0x32b   : > { %780 = vrot.lane.b32.xlu0 %v758_v4, %s1640_s19  ;;  %1052 = vperm.xlu1 %1461, %v374_v59   ;;  %s1536_s19 = sshll.u32 %s1650_s13, 4  ;;  %s1537_s19 = int_to_ptr.vmem [resolvable:$false] %s1536_s19 }
 0x32f   : > { %797 = vrot.lane.b32.xlu0 %v757_v2, %s1642_s25 }
 0x333   : > { %799 = vrot.lane.b32.xlu0 %v758_v4, %s1642_s25  ;;  %s1538_s25 = scalar_lea.vmem %s1537_s19, 64 }
 0x337   : > { %816 = vrot.lane.b32.xlu0 %v757_v2, %s1643_s15  ;;  %s1293_s15 = sshll.u32 %s1833_s20, 1 }
 0x33b   : > { %848 = vrot.lane.b32.xlu0 %v757_v2, %s1644_s17 }
 0x33f   : > { %850 = vrot.lane.b32.xlu0 %v758_v4, %s1644_s17  ;;  %s2098_s17 = scalar_lea.vmem [#allocation9], %s1293_s15 }
 0x343   : > { %867 = vrot.lane.b32.xlu0 %v757_v2, %s1645_s22 }
 0x347   : > { %869 = vrot.lane.b32.xlu0 %v758_v4, %s1645_s22  ;;  %s1365_s22 = sshll.u32 %s1718_s9, 5 }
 0x348   : > { %s2112_s21 = scalar_lea.hbm %s2191_s8, %s1365_s22 }
 0x34b   : > { %888 = vrot.lane.b32.xlu0 %v758_v4, %s1647_s10  ;;  %s1161_s10 = sshll.u32 %s2098_s17, 4  ;;  %s1162_s10 = int_to_ptr.vmem [resolvable:$true] %s1161_s10 }
 0x34c   : > { %s1532_s14 = scalar_lea.vmem %s1162_s10, 32  ;;  %p1539_p13 = scmp.lt.s32.totalorder %s1162_s10, %s1537_s19 }
 0x34d   : > { %p1533_p6 = scmp.ne.s32.totalorder %s1162_s10, %s1532_s14  ;;  %p1540_p3 = scmp.lt.s32.totalorder %s1538_s25, %s1532_s14 }
 0x34f   : > { %907 = vrot.lane.b32.xlu0 %v758_v4, %s1648_s16  ;;  %p1534_p8 = pnand %p1533_p6, %p1788_p12  ;;  %p1541_p7 = por %p1540_p3, %p1539_p13 }
 0x351   : > { %p1535_p10 = pneg %p1534_p8 }
 0x353   : > { %p1542_p9 = pnand %p1541_p7, %p1535_p10 }
 0x391   : > { %v760_v62 = vpop.permute.xlu0 %759  ;;  %v819_v36 = vpop.permute.xlu1 %818 }
 0x395   : > { %v762_v5 = vpop.permute.xlu0 %761  ;;  %v887_v54 = vpop.permute.xlu1 %886 }
 0x396   : > { %v763_v10 = vsel %vm406_vm5, %v760_v62, %v762_v5  ;;  %v764_v11 = vsel %vm406_vm5, %v762_v5, %v760_v62 }
 0x397   : > { %v767_v17 = vmul.f32 %v764_v11, %v1919_v29  ;;  %v768_v20 = vmul.f32 %v763_v10, %v1921_v30  ;;  %v372_v11 = vld [vmem:[%s2188_s5] sm:$0xf] }
 0x399   : > { %v779_v8 = vpop.permute.xlu0 %778 }
 0x39d   : > { %v781_v15 = vpop.permute.xlu0 %780 }
 0x39e   : > { %v782_v12 = vsel %vm426_vm2, %v779_v8, %v781_v15  ;;  %v783_v16 = vsel %vm426_vm2, %v781_v15, %v779_v8  ;;  %v1108_v15 = vunpack.c.l.s4 %v1649_v19 }
 0x39f   : > { %v786_v18 = vmul.f32 %v783_v16, %v1906_v24  ;;  %v787_v21 = vmul.f32 %v782_v12, %v1912_v27 }
 0x3a1   : > { %v798_v22 = vpop.permute.xlu0 %797  ;;  %v1377_v23 = vpack.c.bf16 %v787_v21, %v768_v20  ;;  %v1376_v31 = vpack.c.bf16 %v786_v18, %v767_v17 }
 0x3a3   : > { %987 = vmatprep.subr.bf16.mxu1 %v1377_v23 }
 0x3a4   : > { %988 = vmatpush1.bf16.msra.mxu1 %v1376_v31 }
 0x3a5   : > { %v800_v32 = vpop.permute.xlu0 %799 }
 0x3a6   : > { %v801_v33 = vsel %vm446_vm3, %v798_v22, %v800_v32  ;;  %v802_v34 = vsel %vm446_vm3, %v800_v32, %v798_v22 }
 0x3a7   : > { %v805_v30 = vmul.f32 %v802_v34, %v1947_v47  ;;  %v806_v37 = vmul.f32 %v801_v33, %v1926_v35 }
 0x3a9   : > { %v817_v29 = vpop.permute.xlu0 %816 }
 0x3aa   : > { %v820_v24 = vsel %vm466_vm4, %v817_v29, %v819_v36  ;;  %v821_v27 = vsel %vm466_vm4, %v819_v36, %v817_v29 }
 0x3ab   : > { %v824_v38 = vmul.f32 %v821_v27, %v1936_v40  ;;  %v825_v39 = vmul.f32 %v820_v24, %v1917_v28  ;;  %v838_v40 = vmul.f32 %v758_v4, %v1945_v46  ;;  %v837_v28 = vmul.f32 %v757_v2, %v1962_v61  ;;  %v906_v2 = vpop.permute.xlu1 %905 }
 0x3ad   : > { %v849_v41 = vpop.permute.xlu0 %848  ;;  %v1379_v42 = vpack.c.bf16 %v825_v39, %v806_v37  ;;  %v1378_v43 = vpack.c.bf16 %v824_v38, %v805_v30 }
 0x3af   : > { %989 = vmatprep.subr.bf16.mxu1 %v1379_v42 }
 0x3b0   : > { %990 = vmatpush1.bf16.msra.mxu1 %v1378_v43 }
 0x3b1   : > { %v851_v44 = vpop.permute.xlu0 %850 }
 0x3b2   : > { %v852_v48 = vsel %vm499_vm6, %v849_v41, %v851_v44  ;;  %v853_v49 = vsel %vm499_vm6, %v851_v44, %v849_v41  ;;  %v1053_v41 = vpop.permute.xlu1 %1052 }
 0x3b3   : > { %v856_v47 = vmul.f32 %v852_v48, %v1955_v56  ;;  %v857_v35 = vmul.f32 %v853_v49, %v1943_v45 }
 0x3b5   : > { %v868_v50 = vpop.permute.xlu0 %867  ;;  %v1381_v51 = vpack.c.bf16 %v857_v35, %v838_v40  ;;  %v1380_v52 = vpack.c.bf16 %v856_v47, %v837_v28 }
 0x3b7   : > { %991 = vmatprep.subr.bf16.mxu1 %v1381_v51 }
 0x3b8   : > { %992 = vmatpush1.bf16.msra.mxu1 %v1380_v52 }
 0x3b9   : > { %v870_v53 = vpop.permute.xlu0 %869 }
 0x3ba   : > { %v871_v55 = vsel %vm519_vm7, %v868_v50, %v870_v53  ;;  %v872_v57 = vsel %vm519_vm7, %v870_v53, %v868_v50 }
 0x3bb   : > { %v875_v61 = vmul.f32 %v871_v55, %v1969_v6  ;;  %v876_v58 = vmul.f32 %v872_v57, %v1972_v9 }
 0x3bd   : > { %v889_v56 = vpop.permute.xlu0 %888 }
 0x3be   : > { %v890_v45 = vsel %vm539_vm8, %v887_v54, %v889_v56  ;;  %v891_v46 = vsel %vm539_vm8, %v889_v56, %v887_v54 }
 0x3bf   : > { %v894_v60 = vmul.f32 %v890_v45, %v1978_v13  ;;  %v895_v63 = vmul.f32 %v891_v46, %v1980_v14 }
 0x3c1   : > { %v908_v4 = vpop.permute.xlu0 %907  ;;  %v1383_v59 = vpack.c.bf16 %v895_v63, %v876_v58  ;;  %v1382_v62 = vpack.c.bf16 %v894_v60, %v875_v61 }
 0x3c2   : > { %v909_v5 = vsel %vm559_vm9, %v906_v2, %v908_v4  ;;  %v910_v8 = vsel %vm559_vm9, %v908_v4, %v906_v2 }
 0x3c3   : > { %v913_v10 = vmul.f32 %v909_v5, %v1991_v25  ;;  %v914_v6 = vmul.f32 %v910_v8, %v1993_v26  ;;  %993 = vmatprep.subr.bf16.mxu1 %v1383_v59  ;;  %v1109_v26 = vunpack.c.0.s8 %v1108_v15 }
 0x3c4   : > { %994 = vmatpush1.bf16.msra.mxu1 %v1382_v62 }
 0x3c5   : > { %v1384_v9 = vpack.c.bf16 %v913_v10, %v913_v10  ;;  %v1385_v13 = vpack.c.bf16 %v914_v6, %v914_v6  ;;  %v1112_v32 = vsub.s32 %v1109_v26, %v1849_v1 }
 0x3c7   : > { %1335 = vmatprep.subr.msk.bf16.mxu1 %vm394_vm0, %v1385_v13  ;;  %v982_v14 = vsel %vm394_vm0, %v1384_v9, 0 }
 0x3c8   : > { %996 = vmatpush1.bf16.msra.mxu1 %v982_v14 }
 0x3cb   : > { %1336 = vmatmul.mubr.msk.bf16.vlgmr.msra.gmra.mrb[0].mxu1 %vm629_vm10, %v372_v11 }
 0x49e   : > { %v1021_v25 = vpop.f32.mrb[0].mxu1 }
 0x49f   : > { %v1028_v12 = vmax.f32 %v1021_v25, 0.0  ;;  %v1032_v16 = vadd.f32 1e-08, %v1021_v25  ;;  %v1023_v17 = vpop.f32.mrb[1].mxu1 }
 0x4a0   : > { %v1029_v18 = vmax.f32 %v1023_v17, 0.0  ;;  %v1033_v20 = vadd.f32 1e-08, %v1023_v17  ;;  %v1025_v21 = vpop.f32.mrb[2].mxu1 }
 0x4a1   : > { %v1030_v22 = vmin.f32 %v1028_v12, 1.0  ;;  %1468 = vrcp.f32 %v1032_v16  ;;  %v1026_v23 = vpop.f32.mrb[3].mxu1 }
 0x4a2   : > { %v1031_v31 = vmin.f32 %v1029_v18, 1.0  ;;  %1470 = vrcp.f32 %v1033_v20 }
 0x4a3   : > { %v1060_v0 = vrot.slane %v1030_v22, %v2008_v3 }
 0x4a4   : > { %v1106_v33 = vcombine.high %v1030_v22, %v1031_v31  ;;  %v1064_v49 = vrot.slane %v1031_v31, %v2008_v3 }
 0x4a6   : > { %v1113_v34 = vrot.slane %v1106_v33, %v1112_v32 }
 0x4a8   : > { %v1120_v36 = vrot.slane %v1113_v34, %v1112_v32 }
 0x4aa   : > { %1126 = vst.msk [vmem:[%s2098_s17] sm:$0x3] %vm1124_vm11, %v1120_v36 }
 0x4ab   : > { %v1469_v29 = vpop.eup %1468 }
 0x4ac   : > { %v1471_v24 = vpop.eup %1470  ;;  %v1036_v27 = vmul.f32 9.0, %v1469_v29 }
 0x4ad   : > { %v1037_v30 = vmul.f32 9.0, %v1471_v24 }
 0x4ae   : > { %v1038_v37 = vmul.f32 %v1036_v27, %v1030_v22 }
 0x4af   : > { %v1039_v38 = vmul.f32 %v1037_v30, %v1031_v31 }
 0x4b0   : > { %v1043_v39 = vrot.slane %v1038_v37, %v2008_v3 }
 0x4b1   : > { %v1047_v1 = vrot.slane %v1039_v38, %v2008_v3 }
 0x4b2   : > { %v1048_v42 = vmul.f32 %v1043_v39, %v1021_v25 }
 0x4b3   : > { %v1049_v43 = vmul.f32 %v1047_v1, %v1023_v17 }
 0x4b4   : > { %v1055_v44 = vadd.f32 %v1053_v41, %v1048_v42 }
 0x4b5   : > { %v1056_v48 = vadd.f32 %v1053_v41, %v1049_v43 }
 0x4b6   : > { %v1065_v47 = vmul.f32 %v1060_v0, %v1055_v44 }
 0x4b7   : > { %v1066_v35 = vmul.f32 %v1064_v49, %v1056_v48 }
 0x4b8   : > { %v1067_v40 = vmul.f32 %v1065_v47, %v1065_v47 }
 0x4b9   : > { %v1068_v28 = vmul.f32 %v1066_v35, %v1066_v35 }
 0x4ba   : > { %v1071_v50 = vrot.slane %v1067_v40, 4 }
 0x4bb   : > { %v1072_v51 = vrot.slane %v1068_v28, 4 }
 0x4bc   : > { %v1075_v52 = vsel %vm394_vm0, %v1065_v47, %v1071_v50 }
 0x4bd   : > { %v1076_v53 = vsel %vm394_vm0, %v1066_v35, %v1072_v51 }
 0x4be   : > { %v1077_v54 = vadd.f32 %v1076_v53, %v1075_v52 }
 0x4c0   : > { %1078 = vadd.xlane.f32.xlu0 %v1077_v54 }
 0x54d   : > { %v1079_v55 = vpop.xlane.xlu0 %1078 }
 0x54e   : > { %v1080_v57 = vmul.f32 0.00390625, %v1079_v55 }
 0x550   : > { %v1081_v56 = vmul.f32 %v1080_v57, %v1080_v57 }
 0x552   : > { %v1083_v3 = vrot.slane %v1081_v56, 4 }
 0x554   : > { %v1085_v45 = vsub.f32 %v1080_v57, %v1083_v3 }
 0x556   : > { %v1088_v46 = vadd.f32 1e-05, %v1085_v45 }
 0x558   : > { %1472 = vrsqrt.f32 %v1088_v46 }
 0x562   : > { %v1473_v61 = vpop.eup %1472 }
 0x563   : > { %1092 = vperm.xlu1 %1461, %v1473_v61  }
 0x564   : > { %1545 = shalt.err (!%p1542_p9)
}
 0x565   : > { %s1546_s15 = scalar_lea.hbm %s2112_s21, 32  ;;  %s1550_s16 = scalar_lea.hbm %s2191_s8, 64 }
 0x566   : > { %p1547_p2 = scmp.ne.s32.totalorder %s2112_s21, %s1546_s15  ;;  %p1551_p11 = scmp.lt.u32.totalorder %s2112_s21, %s2191_s8 }
 0x567   : > { %p1552_p1 = scmp.lt.u32.totalorder %s1550_s16, %s1546_s15  ;;  %p1554_p6 = scmp.lt.u32.totalorder %s1546_s15, %s2112_s21 }
 0x568   : > { %p1548_p5 = pnand %p1547_p2, %p1788_p12 }
 0x569   : > { %p1553_p4 = por %p1552_p1, %p1551_p11 }
 0x56a   : > { %p1549_p0 = pneg %p1548_p5 }
 0x56b   : > { %p1555_p8 = por %p1554_p6, %p1553_p4 }
 0x56d   : > { %p1556_p10 = pnand %p1555_p8, %p1549_p0 }
 0x56f   : > { %1559 = shalt.err (!%p1556_p10)
}
 0x570   : > { %1393 = dma.vmem_to_hbm [thread:$0]  (%p1788_p12), %s1162_s10, 32, %s2112_s21, %s1133_s18   ;;  %v1086_v60 = vsub.f32 %v1065_v47, %v1080_v57  ;;  %v1087_v63 = vsub.f32 %v1066_v35, %v1080_v57 }
 0x571   : > { %s1364_s14 = sshll.u32 %s1718_s9, 7  ;;  %s354_s19 = scalar_lea.vmem [#allocation8], %s1290_s26 }
 0x572   : > { %s1147_s25 = sshll.u32 %s354_s19, 4  ;;  %s2139_s22 = scalar_lea.hbm %s2190_s7, %s1364_s14  ;;  %s2141_s25 = int_to_ptr.vmem [resolvable:$true] %s1147_s25 }
 0x573   : > { %s1128_s10 = scalar_lea.sflag [#allocation5], %s1833_s20  ;;  %s1560_s21 = scalar_lea.vmem %s2141_s25, 128 }
 0x574   : > { %p1561_p13 = scmp.ne.s32.totalorder %s2141_s25, %s1560_s21  ;;  %s1651_s9 = smov [#allocation8]  }
 0x575   : > { %s1564_s26 = sshll.u32 %s1651_s9, 4  ;;  %s1565_s26 = int_to_ptr.vmem [resolvable:$false] %s1564_s26 }
 0x576   : > { %p1562_p3 = pnand %p1561_p13, %p1788_p12  ;;  %s1566_s18 = scalar_lea.vmem %s1565_s26, 256 }
 0x577   : > { %p1567_p9 = scmp.lt.s32.totalorder %s2141_s25, %s1565_s26  ;;  %p1568_p2 = scmp.lt.s32.totalorder %s1566_s18, %s1560_s21 }
 0x578   : > { %p1563_p7 = pneg %p1562_p3 }
 0x579   : > { %p1569_p5 = por %p1568_p2, %p1567_p9 }
 0x57b   : > { %p1570_p0 = pnand %p1569_p5, %p1563_p7 }
 0x5e2   : > { %v1093_v58 = vpop.permute.xlu1 %1092 }
 0x5e3   : > { %v1094_v2 = vrot.slane %v1093_v58, 4 }
 0x5e5   : > { %v1096_v4 = vmul.f32 %v1094_v2, %v1086_v60  ;;  %v1097_v59 = vmul.f32 %v1094_v2, %v1087_v63 }
 0x5e7   : > { %v1100_v62 = vcombine.low %v1096_v4, %v1097_v59 }
 0x5e9   : > { %v1102_v5 = vadd.f32 %v1100_v62, %v1856_v7 }
 0x5eb   : > { %1103 = vst [vmem:[%s354_s19] sm:$0xff] %v1102_v5 }
 0x5ec   : > { %1573 = shalt.err (!%p1570_p0)
}
 0x5ed   : > { %s1574_s20 = scalar_lea.hbm %s2139_s22, 128  ;;  %s1578_s13 = scalar_lea.hbm %s2190_s7, 256 }
 0x5ee   : > { %p1575_p11 = scmp.ne.s32.totalorder %s2139_s22, %s1574_s20  ;;  %p1579_p6 = scmp.lt.u32.totalorder %s2139_s22, %s2190_s7 }
 0x5ef   : > { %p1580_p8 = scmp.lt.u32.totalorder %s1578_s13, %s1574_s20  ;;  %p1582_p13 = scmp.lt.u32.totalorder %s1574_s20, %s2139_s22 }
 0x5f0   : > { %p1576_p1 = pnand %p1575_p11, %p1788_p12 }
 0x5f1   : > { %p1581_p10 = por %p1580_p8, %p1579_p6 }
 0x5f2   : > { %p1577_p4 = pneg %p1576_p1 }
 0x5f3   : > { %p1583_p3 = por %p1582_p13, %p1581_p10 }
 0x5f5   : > { %p1584_p7 = pnand %p1583_p3, %p1577_p4 }
 0x5f7   : > { %1587 = shalt.err (!%p1584_p7)
}
 0x5f8   : > { %1392 = dma.vmem_to_hbm [thread:$0]  (%p1788_p12), %s2141_s25, 128, %s2139_s22, %s1128_s10  }
 0x5f9 PF: > { %s1173_s15 = sand.u32 1, %s1622_s27   ;;  %p2209_p9 = scmp.ne.s32.totalorder %s2198_s12, 0 }
 0x5fa   : > { %p2210_p2 = scmp.ge.s32.totalorder %s1634_s30, 2  ;;  %s1174_s17 = scalar_lea.sflag [#allocation5], %s1173_s15 }
 0x5fc   : > { %p1405_p5 = pnand %p2210_p2, %p2209_p9 }
 0x5fe   : > { %1613 = dma.done.wait (!%p1405_p5), %s1174_s17, 128  }
 0x5ff   : > { %1615 = vsyncadd (!%p1405_p5), %s1174_s17, 4294967168  ;;  %s1183_s21 = scalar_lea.sflag [#allocation10], %s1173_s15 }
 0x600   : > { %1617 = dma.done.wait (!%p1405_p5), %s1183_s21, 32  }
 0x601   : > { %1619 = vsyncadd (!%p1405_p5), %s1183_s21, 4294967264  ;;  %s2211_s30 = sld [smem:[#allocation15_spill]]  ;;  %s2212_s27 = smov %s1626_s28 }
 0x602   : > { %s2213_s28 = smov %s1630_s29  ;;  %s2214_s29 = smov %s1784_s23 }
 0x607   : > { %p26_p12 = scmp.ge.s32.totalorder %s2211_s30, 4  }
 0x609   :  { %28 = sbr.rel (!%p26_p12) target bundleno = 8 (0x8), region = 117 }
 0x610   :  { %1188 = vsyncpa [#allocation4], 1 }
 0x611   :  { %1190 = vsyncpa [#allocation4 + $0x1], 1 }
 0x612   :  { %1191 = vsyncpa [#allocation7], 1 }
 0x613   :  { %1192 = vsyncpa [#allocation5], 1 }
 0x614   :  { %1194 = vsyncpa [#allocation5 + $0x1], 1 }
 0x615   :  { %1195 = vsyncpa [#allocation10], 1 }
 0x616   :  { %1197 = vsyncpa [#allocation10 + $0x1], 1 }

</bundles_post_ra>
